<compile_context>
chip_gen: v7x
topology: tpu7x:2x2x1
jax: 0.10.0
libtpu: 0.0.40
codegen_flags: <defaults>
</compile_context>

<pallas_src>
import jax
import jax.numpy as jnp
from jax import lax
from jax.experimental import pallas as pl
from jax.experimental.pallas import tpu as pltpu


def _same_pads(kernel_size, stride):
    """Reproduces get_padding_shape(): pad_along = max(k - s, 0), split top/bottom."""
    pads = []
    for k, s in zip(kernel_size, stride):
        pad_along = max(k - s, 0)
        top = pad_along // 2
        pads.append((top, pad_along - top))
    return tuple(pads)  # ((dt, db), (ht, hb), (wt, wb))


def _ceil_to(v, m):
    return -(-v // m) * m


def _tile_padded_bytes(shape, dtype):
    """Physical VMEM footprint of one buffer: minor dim padded to 128 lanes,
    second-minor to the dtype's sublane tile (8 for 4-byte, 16 for 2-byte)."""
    itemsize = jnp.dtype(dtype).itemsize
    sublane = max(8, 32 // max(itemsize, 1))
    if len(shape) == 0:
        return sublane * 128 * itemsize
    lanes = _ceil_to(int(shape[-1]), 128)
    subl = _ceil_to(int(shape[-2]), sublane) if len(shape) >= 2 else sublane
    lead = 1
    for s in shape[:-2]:
        lead *= int(s)
    return lead * subl * lanes * itemsize


def _pick_depth_block(d_out, h_out, *, target_rows, max_rows, min_blocks=1):
    """Largest divisor TD of d_out such that (TD*h_out) is sublane-legal
    (% 8 == 0 or TD == d_out), stays under the VMEM-derived row cap, reaches
    target_rows if possible, and leaves >= min_blocks depth blocks."""
    best = None
    for td in range(1, d_out + 1):
        if d_out % td:
            continue
        rows = td * h_out
        if (rows % 8 != 0) and (td != d_out):
            continue  # would violate the (8,128) sublane rule on the out block
        if best is not None and (d_out // td) < min_blocks:
            break
        if best is not None and rows > max_rows:
            break
        best = td
        if rows >= target_rows:
            break
    return best if best is not None else d_out


def _build_band_weight(w_oidhw, w_pad, w_out, sw, dtype):
    """Banded (block-Toeplitz over W) weight:
         band[kt, kh, w*C_in + ci, w0*C_out + co] =
             w[co, ci, kt, kh, w - w0*sw]   if 0 <= w - w0*sw < KW else 0.
    Folding W/KW/C_in into the contraction lets the kernel feed full
    (rows, W_pad*C_in) input slabs straight into the MXU and receive the
    lane-dense (rows, W_out*C_out) output directly (no relayout)."""
    c_out, c_in, kt, kh, kw = w_oidhw.shape
    w_t = jnp.transpose(w_oidhw, (2, 3, 4, 1, 0))  # (KT, KH, KW, C_in, C_out)
    band = jnp.zeros((kt, kh, w_pad, c_in, w_out, c_out), w_t.dtype)
    for w0 in range(w_out):
        band = band.at[:, :, w0 * sw:w0 * sw + kw, :, w0, :].set(w_t)
    return band.reshape(kt, kh, w_pad * c_in, w_out * c_out).astype(dtype)


def unit3d_forward_pallas(x_ncdhw, w_oidhw, bn_scale, bn_bias,
                          stride=(1, 1, 1), padding="SAME",
                          compute_dtype=jnp.bfloat16):
    """Forward pass of Unit3Dpy (conv3d -> BN(eval) -> relu); hot path is a
    Pallas TPU kernel on lane-flattened NDH(W*C) data with a banded weight."""
    N, C_in, T, H, W = x_ncdhw.shape
    C_out, C_in_w, KT, KH, KW = w_oidhw.shape
    assert C_in == C_in_w
    ST, SH, SW = stride

    if padding == "SAME":
        (pt0, pt1), (ph0, ph1), (pw0, pw1) = _same_pads((KT, KH, KW), stride)
    elif padding == "VALID":
        pt0 = pt1 = ph0 = ph1 = pw0 = pw1 = 0
    else:
        raise ValueError(padding)

    # ---- plain-JAX glue: layout + zero pad; C_in flattened into the lane dim
    # next to W so the kernel never lane-slices tiny channel chunks. ----
    x = jnp.transpose(x_ncdhw, (0, 2, 3, 4, 1)).astype(compute_dtype)  # NDHWC
    x = jnp.pad(x, ((0, 0), (pt0, pt1), (ph0, ph1), (pw0, pw1), (0, 0)))
    _, D_pad, H_pad, W_pad, _ = x.shape
    D_out = (D_pad - KT) // ST + 1
    H_out = (H_pad - KH) // SH + 1
    W_out = (W_pad - KW) // SW + 1
    WpC = W_pad * C_in            # matmul K (per (kt,kh) tap pair)
    WC = W_out * C_out            # lane-dense output minor dim
    x = x.reshape(N, D_pad, H_pad, WpC)

    # Banded weight (W stride folded in) + BN scale/bias pre-tiled to the
    # lane-dense (1, W_out*C_out) layout for a full-lane-occupancy epilogue.
    # TODO(synk): for large C_in/C_out/W (real I3D stages) the banded weight is
    # O(W_pad*C_in * W_out*C_out * KT*KH) and stops fitting VMEM; switch those
    # layers to the im2col-in-VMEM formulation with streamed depth/H slabs
    # (memory_space=pl.ANY + manual double-buffered make_async_copy).
    band = _build_band_weight(w_oidhw, W_pad, W_out, SW, compute_dtype)
    scale_wc = jnp.tile(bn_scale.astype(jnp.float32), W_out).reshape(1, WC)
    bias_wc = jnp.tile(bn_bias.astype(jnp.float32), W_out).reshape(1, WC)

    # ---- depth-block (TD) choice: enough matmul M rows per grid step to
    # amortize per-step pipeline overhead, capped by tile-padded VMEM cost. ----
    esize = jnp.dtype(compute_dtype).itemsize
    wc_pad = _ceil_to(WC, 128)
    wpc_pad = _ceil_to(WpC, 128)
    bytes_per_row = 2 * wc_pad * esize + 4 * wc_pad + esize * wpc_pad
    rows_cap = max(8, (16 * 2**20) // bytes_per_row)
    TD = _pick_depth_block(D_out, H_out, target_rows=2048, max_rows=rows_cap,
                           min_blocks=2 if N == 1 else 1)
    TD_IN = (TD - 1) * ST + KT     # input planes needed per depth block (halo)
    n_dblk = D_out // TD

    # ---- Pallas kernel: one (batch, depth-block) program per grid step ----
    def kernel(x_ref, band_ref, scale_ref, bias_ref, o_ref):
        d_start = pl.multiple_of(pl.program_id(1) * (TD * ST), TD * ST)
        # Resident slab of input planes for this depth block (+ KT-1 halo).
        planes = x_ref[0, pl.ds(d_start, TD_IN)]          # (TD_IN, H_pad, WpC)
        acc = jnp.zeros((TD * H_out, WC), jnp.float32)
        for kt in range(KT):
            for kh in range(KH):
                # TODO(synk): for SH/ST > 1 these strided value slices pay a
                # copy; pre-gathering phases in the wrapper would help there.
                lhs = planes[kt:kt + (TD - 1) * ST + 1:ST,
                             kh:kh + (H_out - 1) * SH + 1:SH, :]
                lhs = lhs.reshape(TD * H_out, WpC)          # leading-dim merge
                acc = acc + jnp.dot(lhs, band_ref[kt, kh],
                                    preferred_element_type=jnp.float32)
        # Folded BN(eval) + ReLU on the lane-dense slab, one wide unmasked store.
        out = jnp.maximum(acc * scale_ref[...] + bias_ref[...], 0.0)
        o_ref[0] = out.astype(o_ref.dtype)

    # ---- VMEM budget from tile-padded physical sizes ----
    x_blk = _tile_padded_bytes((1, D_pad, H_pad, WpC), compute_dtype)
    band_b = _tile_padded_bytes((KT, KH, WpC, WC), compute_dtype)
    sb_b = 2 * _tile_padded_bytes((1, WC), jnp.float32)
    out_blk = _tile_padded_bytes((1, TD * H_out, WC), compute_dtype)
    scratch = _ceil_to(TD * H_out, 8) * (4 * wc_pad + 2 * esize * wpc_pad)
    vmem_needed = 2 * x_blk + 2 * out_blk + 2 * (band_b + sb_b) + scratch
    vmem_limit = int(min(64 * 2**20, max(16 * 2**20, 2 * vmem_needed)))

    flops = 2 * N * n_dblk * KT * KH * (TD * H_out) * WpC * WC
    bytes_accessed = int(x.size * esize + band.size * esize
                         + N * D_out * H_out * WC * esize + 2 * WC * 4)

    def build(single_buffer_invariants):
        inv = {}
        if single_buffer_invariants:
            # Grid-invariant operands: one VMEM buffer is enough (halves their
            # VMEM footprint; matters for production-size weights).
            inv = dict(pipeline_mode=pl.Buffered(buffer_count=1))
        return pl.pallas_call(
            kernel,
            out_shape=jax.ShapeDtypeStruct((N, D_out * H_out, WC), compute_dtype),
            grid_spec=pltpu.PrefetchScalarGridSpec(
                num_scalar_prefetch=0,
                grid=(N, n_dblk),
                in_specs=[
                    # Whole padded volume per batch element, resident across d.
                    # TODO(synk): for real I3D sizes stream KT+(TD-1)*ST-plane
                    # depth slabs (and tile H with a KH-1 halo) via pl.ANY +
                    # manual double-buffered DMA so it fits v7x's 64 MiB VMEM.
                    pl.BlockSpec((1, D_pad, H_pad, WpC),
                                 lambda n, d: (n, 0, 0, 0)),
                    pl.BlockSpec((KT, KH, WpC, WC),
                                 lambda n, d: (0, 0, 0, 0), **inv),
                    pl.BlockSpec((1, WC), lambda n, d: (0, 0), **inv),
                    pl.BlockSpec((1, WC), lambda n, d: (0, 0), **inv),
                ],
                out_specs=pl.BlockSpec((1, TD * H_out, WC),
                                       lambda n, d: (n, d, 0)),
            ),
            compiler_params=pltpu.CompilerParams(
                dimension_semantics=("parallel", "parallel"),
                vmem_limit_bytes=vmem_limit),
            cost_estimate=pl.CostEstimate(flops=flops, transcendentals=0,
                                          bytes_accessed=bytes_accessed),
        )

    try:
        out_flat = build(True)(x, band, scale_wc, bias_wc)
    except Exception:
        # pipeline_mode=pl.Buffered(1) not supported by this jax/Mosaic build;
        # fall back to default double-buffering (identical numerics).
        out_flat = build(False)(x, band, scale_wc, bias_wc)

    # Un-flatten the lane-dense slab and go back to PyTorch NCDHW layout.
    out = out_flat.reshape(N, D_out, H_out, W_out, C_out)
    return jnp.transpose(out, (0, 4, 1, 2, 3))   # dtype == compute_dtype


def unit3d_forward_ref(x_ncdhw, w_oidhw, bn_scale, bn_bias,
                       stride=(1, 1, 1), padding="SAME"):
    """Pure-JAX reference (lax.conv) for correctness checking."""
    KT, KH, KW = w_oidhw.shape[2:]
    if padding == "SAME":
        pads = list(_same_pads((KT, KH, KW), stride))
    else:
        pads = [(0, 0)] * 3
    out = lax.conv_general_dilated(
        x_ncdhw, w_oidhw, window_strides=stride, padding=pads,
        dimension_numbers=("NCDHW", "OIDHW", "NCDHW"),
        preferred_element_type=jnp.float32)
    out = out * bn_scale[None, :, None, None, None] + \
        bn_bias[None, :, None, None, None]
    return jnp.maximum(out, 0.0)


if __name__ == "__main__":
    # Unit3Dpy(in_channels=4, out_channels=8, kernel_size=(3,3,3),
    #          stride=(1,1,1), activation='relu', padding='SAME',
    #          use_bias=False, use_bn=True)
    N, C_in, T, H, W = 2, 4, 8, 16, 16
    C_out = 8
    ksize = (3, 3, 3)
    stride = (1, 1, 1)

    key = jax.random.PRNGKey(0)
    kx, kw, kg, kb, km, kv = jax.random.split(key, 6)

    x = jax.random.normal(kx, (N, C_in, T, H, W), dtype=jnp.float32)
    w = 0.1 * jax.random.normal(kw, (C_out, C_in) + ksize, dtype=jnp.float32)

    # BatchNorm3d(out_channels) parameters / running stats (eval mode), eps=1e-5
    gamma = jax.random.uniform(kg, (C_out,), minval=0.5, maxval=1.5,
                               dtype=jnp.float32)
    beta = 0.1 * jax.random.normal(kb, (C_out,), dtype=jnp.float32)
    running_mean = 0.1 * jax.random.normal(km, (C_out,), dtype=jnp.float32)
    running_var = jax.random.uniform(kv, (C_out,), minval=0.5, maxval=1.5,
                                     dtype=jnp.float32)
    eps = 1e-5
    bn_scale = gamma / jnp.sqrt(running_var + eps)
    bn_bias = beta - running_mean * bn_scale

    # ---- f32 path: tight check against the f32 lax.conv reference ----
    out_f32 = unit3d_forward_pallas(x, w, bn_scale, bn_bias, stride=stride,
                                    compute_dtype=jnp.float32)
    out_f32 = jax.block_until_ready(out_f32)
    ref_f32 = unit3d_forward_ref(x, w, bn_scale, bn_bias, stride=stride)
    assert out_f32.shape == ref_f32.shape == (N, C_out, T, H, W)
    assert jnp.allclose(out_f32, ref_f32, atol=1e-4, rtol=1e-4), \
        f"f32 max abs err {jnp.max(jnp.abs(out_f32 - ref_f32))}"

    # ---- bf16 operands / f32 accumulation path (default); kernel emits bf16 ----
    out_bf16 = unit3d_forward_pallas(x, w, bn_scale, bn_bias, stride=stride,
                                     compute_dtype=jnp.bfloat16)
    out_bf16 = jax.block_until_ready(out_bf16)
    assert out_bf16.dtype == jnp.bfloat16
    ref_bf16 = unit3d_forward_ref(x.astype(jnp.bfloat16),
                                  w.astype(jnp.bfloat16),
                                  bn_scale, bn_bias, stride=stride)
    out_bf16_f32 = out_bf16.astype(jnp.float32)
    assert jnp.allclose(out_bf16_f32, ref_bf16, atol=2e-2, rtol=2e-2), \
        f"bf16 max abs err {jnp.max(jnp.abs(out_bf16_f32 - ref_bf16))}"

    print("KERNEL_OK")
</pallas_src>

<mosaic_0001>
module attributes {stable_mosaic.version = 11 : i64} {
  func.func @kernel(%arg0: i32, %arg1: i32, %arg2: memref<1x10x18x72xf32, #tpu.memory_space<vmem>>, %arg3: memref<3x3x72x128xf32, #tpu.memory_space<vmem>>, %arg4: memref<1x128xf32, #tpu.memory_space<vmem>>, %arg5: memref<1x128xf32, #tpu.memory_space<vmem>>, %arg6: memref<1x128x128xf32, #tpu.memory_space<vmem>>) attributes {dimension_semantics = [#tpu.dimension_semantics<parallel>, #tpu.dimension_semantics<parallel>], iteration_bounds = array<i64: 2, 1>, scalar_prefetch = 0 : i64, scratch_operands = 0 : i64, tpu.core_type = #tpu.core_type<tc>, window_params = [{transform_indices = @transform_0, window_bounds = array<i64: 1, 10, 18, 72>}, {pipeline_mode = #tpu.pipeline_mode<synchronous>, transform_indices = @transform_1, window_bounds = array<i64: 3, 3, 72, 128>}, {pipeline_mode = #tpu.pipeline_mode<synchronous>, transform_indices = @transform_2, window_bounds = array<i64: 1, 128>}, {pipeline_mode = #tpu.pipeline_mode<synchronous>, transform_indices = @transform_3, window_bounds = array<i64: 1, 128>}, {transform_indices = @transform_4, window_bounds = array<i64: 1, 128, 128>}]} {
    %c8_i32 = arith.constant 8 : i32
    %0 = arith.muli %arg1, %c8_i32 : i32
    %1 = tpu.assume_multiple %0, 8 : i32
    %c0 = arith.constant 0 : index
    %2 = arith.index_cast %1 : i32 to index
    %c0_0 = arith.constant 0 : index
    %c0_1 = arith.constant 0 : index
    %3 = vector.load %arg2[%c0, %2, %c0_0, %c0_1] : memref<1x10x18x72xf32, #tpu.memory_space<vmem>>, vector<1x10x18x72xf32>
    %4 = vector.shape_cast %3 : vector<1x10x18x72xf32> to vector<10x18x72xf32>
    %cst = arith.constant 0.000000e+00 : f32
    %5 = vector.broadcast %cst : f32 to vector<128x128xf32>
    %6 = vector.extract_strided_slice %4 {offsets = [0, 0, 0], sizes = [8, 16, 72], strides = [1, 1, 1]} : vector<10x18x72xf32> to vector<8x16x72xf32>
    %7 = vector.shape_cast %6 : vector<8x16x72xf32> to vector<128x72xf32>
    %c0_2 = arith.constant 0 : index
    %c0_3 = arith.constant 0 : index
    %c0_4 = arith.constant 0 : index
    %c0_5 = arith.constant 0 : index
    %8 = vector.load %arg3[%c0_2, %c0_3, %c0_4, %c0_5] : memref<3x3x72x128xf32, #tpu.memory_space<vmem>>, vector<1x1x72x128xf32>
    %9 = vector.shape_cast %8 : vector<1x1x72x128xf32> to vector<72x128xf32>
    %cst_6 = arith.constant dense<0.000000e+00> : vector<128x128xf32>
    %10 = tpu.matmul %7, %9, %cst_6 {dimension_numbers = #tpu.dot_dimension_numbers<[1], [0], [0], [1], [0, 0, 1, 1], [], []>} : vector<128x72xf32>, vector<72x128xf32>, vector<128x128xf32> -> vector<128x128xf32>
    %11 = arith.addf %5, %10 : vector<128x128xf32>
    %12 = vector.extract_strided_slice %4 {offsets = [0, 1, 0], sizes = [8, 16, 72], strides = [1, 1, 1]} : vector<10x18x72xf32> to vector<8x16x72xf32>
    %13 = vector.shape_cast %12 : vector<8x16x72xf32> to vector<128x72xf32>
    %c0_7 = arith.constant 0 : index
    %c1 = arith.constant 1 : index
    %c0_8 = arith.constant 0 : index
    %c0_9 = arith.constant 0 : index
    %14 = vector.load %arg3[%c0_7, %c1, %c0_8, %c0_9] : memref<3x3x72x128xf32, #tpu.memory_space<vmem>>, vector<1x1x72x128xf32>
    %15 = vector.shape_cast %14 : vector<1x1x72x128xf32> to vector<72x128xf32>
    %cst_10 = arith.constant dense<0.000000e+00> : vector<128x128xf32>
    %16 = tpu.matmul %13, %15, %cst_10 {dimension_numbers = #tpu.dot_dimension_numbers<[1], [0], [0], [1], [0, 0, 1, 1], [], []>} : vector<128x72xf32>, vector<72x128xf32>, vector<128x128xf32> -> vector<128x128xf32>
    %17 = arith.addf %11, %16 : vector<128x128xf32>
    %18 = vector.extract_strided_slice %4 {offsets = [0, 2, 0], sizes = [8, 16, 72], strides = [1, 1, 1]} : vector<10x18x72xf32> to vector<8x16x72xf32>
    %19 = vector.shape_cast %18 : vector<8x16x72xf32> to vector<128x72xf32>
    %c0_11 = arith.constant 0 : index
    %c2 = arith.constant 2 : index
    %c0_12 = arith.constant 0 : index
    %c0_13 = arith.constant 0 : index
    %20 = vector.load %arg3[%c0_11, %c2, %c0_12, %c0_13] : memref<3x3x72x128xf32, #tpu.memory_space<vmem>>, vector<1x1x72x128xf32>
    %21 = vector.shape_cast %20 : vector<1x1x72x128xf32> to vector<72x128xf32>
    %cst_14 = arith.constant dense<0.000000e+00> : vector<128x128xf32>
    %22 = tpu.matmul %19, %21, %cst_14 {dimension_numbers = #tpu.dot_dimension_numbers<[1], [0], [0], [1], [0, 0, 1, 1], [], []>} : vector<128x72xf32>, vector<72x128xf32>, vector<128x128xf32> -> vector<128x128xf32>
    %23 = arith.addf %17, %22 : vector<128x128xf32>
    %24 = vector.extract_strided_slice %4 {offsets = [1, 0, 0], sizes = [8, 16, 72], strides = [1, 1, 1]} : vector<10x18x72xf32> to vector<8x16x72xf32>
    %25 = vector.shape_cast %24 : vector<8x16x72xf32> to vector<128x72xf32>
    %c1_15 = arith.constant 1 : index
    %c0_16 = arith.constant 0 : index
    %c0_17 = arith.constant 0 : index
    %c0_18 = arith.constant 0 : index
    %26 = vector.load %arg3[%c1_15, %c0_16, %c0_17, %c0_18] : memref<3x3x72x128xf32, #tpu.memory_space<vmem>>, vector<1x1x72x128xf32>
    %27 = vector.shape_cast %26 : vector<1x1x72x128xf32> to vector<72x128xf32>
    %cst_19 = arith.constant dense<0.000000e+00> : vector<128x128xf32>
    %28 = tpu.matmul %25, %27, %cst_19 {dimension_numbers = #tpu.dot_dimension_numbers<[1], [0], [0], [1], [0, 0, 1, 1], [], []>} : vector<128x72xf32>, vector<72x128xf32>, vector<128x128xf32> -> vector<128x128xf32>
    %29 = arith.addf %23, %28 : vector<128x128xf32>
    %30 = vector.extract_strided_slice %4 {offsets = [1, 1, 0], sizes = [8, 16, 72], strides = [1, 1, 1]} : vector<10x18x72xf32> to vector<8x16x72xf32>
    %31 = vector.shape_cast %30 : vector<8x16x72xf32> to vector<128x72xf32>
    %c1_20 = arith.constant 1 : index
    %c1_21 = arith.constant 1 : index
    %c0_22 = arith.constant 0 : index
    %c0_23 = arith.constant 0 : index
    %32 = vector.load %arg3[%c1_20, %c1_21, %c0_22, %c0_23] : memref<3x3x72x128xf32, #tpu.memory_space<vmem>>, vector<1x1x72x128xf32>
    %33 = vector.shape_cast %32 : vector<1x1x72x128xf32> to vector<72x128xf32>
    %cst_24 = arith.constant dense<0.000000e+00> : vector<128x128xf32>
    %34 = tpu.matmul %31, %33, %cst_24 {dimension_numbers = #tpu.dot_dimension_numbers<[1], [0], [0], [1], [0, 0, 1, 1], [], []>} : vector<128x72xf32>, vector<72x128xf32>, vector<128x128xf32> -> vector<128x128xf32>
    %35 = arith.addf %29, %34 : vector<128x128xf32>
    %36 = vector.extract_strided_slice %4 {offsets = [1, 2, 0], sizes = [8, 16, 72], strides = [1, 1, 1]} : vector<10x18x72xf32> to vector<8x16x72xf32>
    %37 = vector.shape_cast %36 : vector<8x16x72xf32> to vector<128x72xf32>
    %c1_25 = arith.constant 1 : index
    %c2_26 = arith.constant 2 : index
    %c0_27 = arith.constant 0 : index
    %c0_28 = arith.constant 0 : index
    %38 = vector.load %arg3[%c1_25, %c2_26, %c0_27, %c0_28] : memref<3x3x72x128xf32, #tpu.memory_space<vmem>>, vector<1x1x72x128xf32>
    %39 = vector.shape_cast %38 : vector<1x1x72x128xf32> to vector<72x128xf32>
    %cst_29 = arith.constant dense<0.000000e+00> : vector<128x128xf32>
    %40 = tpu.matmul %37, %39, %cst_29 {dimension_numbers = #tpu.dot_dimension_numbers<[1], [0], [0], [1], [0, 0, 1, 1], [], []>} : vector<128x72xf32>, vector<72x128xf32>, vector<128x128xf32> -> vector<128x128xf32>
    %41 = arith.addf %35, %40 : vector<128x128xf32>
    %42 = vector.extract_strided_slice %4 {offsets = [2, 0, 0], sizes = [8, 16, 72], strides = [1, 1, 1]} : vector<10x18x72xf32> to vector<8x16x72xf32>
    %43 = vector.shape_cast %42 : vector<8x16x72xf32> to vector<128x72xf32>
    %c2_30 = arith.constant 2 : index
    %c0_31 = arith.constant 0 : index
    %c0_32 = arith.constant 0 : index
    %c0_33 = arith.constant 0 : index
    %44 = vector.load %arg3[%c2_30, %c0_31, %c0_32, %c0_33] : memref<3x3x72x128xf32, #tpu.memory_space<vmem>>, vector<1x1x72x128xf32>
    %45 = vector.shape_cast %44 : vector<1x1x72x128xf32> to vector<72x128xf32>
    %cst_34 = arith.constant dense<0.000000e+00> : vector<128x128xf32>
    %46 = tpu.matmul %43, %45, %cst_34 {dimension_numbers = #tpu.dot_dimension_numbers<[1], [0], [0], [1], [0, 0, 1, 1], [], []>} : vector<128x72xf32>, vector<72x128xf32>, vector<128x128xf32> -> vector<128x128xf32>
    %47 = arith.addf %41, %46 : vector<128x128xf32>
    %48 = vector.extract_strided_slice %4 {offsets = [2, 1, 0], sizes = [8, 16, 72], strides = [1, 1, 1]} : vector<10x18x72xf32> to vector<8x16x72xf32>
    %49 = vector.shape_cast %48 : vector<8x16x72xf32> to vector<128x72xf32>
    %c2_35 = arith.constant 2 : index
    %c1_36 = arith.constant 1 : index
    %c0_37 = arith.constant 0 : index
    %c0_38 = arith.constant 0 : index
    %50 = vector.load %arg3[%c2_35, %c1_36, %c0_37, %c0_38] : memref<3x3x72x128xf32, #tpu.memory_space<vmem>>, vector<1x1x72x128xf32>
    %51 = vector.shape_cast %50 : vector<1x1x72x128xf32> to vector<72x128xf32>
    %cst_39 = arith.constant dense<0.000000e+00> : vector<128x128xf32>
    %52 = tpu.matmul %49, %51, %cst_39 {dimension_numbers = #tpu.dot_dimension_numbers<[1], [0], [0], [1], [0, 0, 1, 1], [], []>} : vector<128x72xf32>, vector<72x128xf32>, vector<128x128xf32> -> vector<128x128xf32>
    %53 = arith.addf %47, %52 : vector<128x128xf32>
    %54 = vector.extract_strided_slice %4 {offsets = [2, 2, 0], sizes = [8, 16, 72], strides = [1, 1, 1]} : vector<10x18x72xf32> to vector<8x16x72xf32>
    %55 = vector.shape_cast %54 : vector<8x16x72xf32> to vector<128x72xf32>
    %c2_40 = arith.constant 2 : index
    %c2_41 = arith.constant 2 : index
    %c0_42 = arith.constant 0 : index
    %c0_43 = arith.constant 0 : index
    %56 = vector.load %arg3[%c2_40, %c2_41, %c0_42, %c0_43] : memref<3x3x72x128xf32, #tpu.memory_space<vmem>>, vector<1x1x72x128xf32>
    %57 = vector.shape_cast %56 : vector<1x1x72x128xf32> to vector<72x128xf32>
    %cst_44 = arith.constant dense<0.000000e+00> : vector<128x128xf32>
    %58 = tpu.matmul %55, %57, %cst_44 {dimension_numbers = #tpu.dot_dimension_numbers<[1], [0], [0], [1], [0, 0, 1, 1], [], []>} : vector<128x72xf32>, vector<72x128xf32>, vector<128x128xf32> -> vector<128x128xf32>
    %59 = arith.addf %53, %58 : vector<128x128xf32>
    %c0_45 = arith.constant 0 : index
    %c0_46 = arith.constant 0 : index
    %60 = vector.load %arg4[%c0_45, %c0_46] : memref<1x128xf32, #tpu.memory_space<vmem>>, vector<1x128xf32>
    %61 = vector.broadcast %60 : vector<1x128xf32> to vector<128x128xf32>
    %62 = arith.mulf %59, %61 : vector<128x128xf32>
    %c0_47 = arith.constant 0 : index
    %c0_48 = arith.constant 0 : index
    %63 = vector.load %arg5[%c0_47, %c0_48] : memref<1x128xf32, #tpu.memory_space<vmem>>, vector<1x128xf32>
    %64 = vector.broadcast %63 : vector<1x128xf32> to vector<128x128xf32>
    %65 = arith.addf %62, %64 : vector<128x128xf32>
    %cst_49 = arith.constant 0.000000e+00 : f32
    %66 = vector.broadcast %cst_49 : f32 to vector<128x128xf32>
    %67 = arith.maximumf %65, %66 : vector<128x128xf32>
    %c0_50 = arith.constant 0 : index
    %c0_51 = arith.constant 0 : index
    %c0_52 = arith.constant 0 : index
    %68 = vector.load %arg6[%c0_50, %c0_51, %c0_52] : memref<1x128x128xf32, #tpu.memory_space<vmem>>, vector<1x128x128xf32>
    %69 = vector.shape_cast %68 : vector<1x128x128xf32> to vector<128x128xf32>
    %70 = vector.shape_cast %67 : vector<128x128xf32> to vector<1x128x128xf32>
    tpu.vector_store %arg6[%c0_50, %c0_51, %c0_52], %70 {strides = array<i32>} : memref<1x128x128xf32, #tpu.memory_space<vmem>>, vector<1x128x128xf32>,
    return
  }
  func.func @transform_0(%arg0: i32, %arg1: i32) -> (i32, i32, i32, i32) {
    %c0_i32 = arith.constant 0 : i32
    %c0_i32_0 = arith.constant 0 : i32
    %c0_i32_1 = arith.constant 0 : i32
    %c0_i32_2 = arith.constant 0 : i32
    return %arg0, %c0_i32, %c0_i32_0, %c0_i32_1 : i32, i32, i32, i32
  }
  func.func @transform_1(%arg0: i32, %arg1: i32) -> (i32, i32, i32, i32) {
    %c0_i32 = arith.constant 0 : i32
    %c0_i32_0 = arith.constant 0 : i32
    %c0_i32_1 = arith.constant 0 : i32
    %c0_i32_2 = arith.constant 0 : i32
    %c0_i32_3 = arith.constant 0 : i32
    return %c0_i32, %c0_i32_0, %c0_i32_1, %c0_i32_2 : i32, i32, i32, i32
  }
  func.func @transform_2(%arg0: i32, %arg1: i32) -> (i32, i32) {
    %c0_i32 = arith.constant 0 : i32
    %c0_i32_0 = arith.constant 0 : i32
    %c0_i32_1 = arith.constant 0 : i32
    return %c0_i32, %c0_i32_0 : i32, i32
  }
  func.func @transform_3(%arg0: i32, %arg1: i32) -> (i32, i32) {
    %c0_i32 = arith.constant 0 : i32
    %c0_i32_0 = arith.constant 0 : i32
    %c0_i32_1 = arith.constant 0 : i32
    return %c0_i32, %c0_i32_0 : i32, i32
  }
  func.func @transform_4(%arg0: i32, %arg1: i32) -> (i32, i32, i32) {
    %c0_i32 = arith.constant 0 : i32
    %c0_i32_0 = arith.constant 0 : i32
    return %arg0, %arg1, %c0_i32 : i32, i32, i32
  }
}

module attributes {stable_mosaic.version = 11 : i64} {
  func.func @kernel(%arg0: i32, %arg1: i32, %arg2: memref<1x10x18x72xf32, #tpu.memory_space<vmem>>, %arg3: memref<3x3x72x128xf32, #tpu.memory_space<vmem>>, %arg4: memref<1x128xf32, #tpu.memory_space<vmem>>, %arg5: memref<1x128xf32, #tpu.memory_space<vmem>>, %arg6: memref<1x128x128xf32, #tpu.memory_space<vmem>>) attributes {dimension_semantics = [#tpu.dimension_semantics<parallel>, #tpu.dimension_semantics<parallel>], iteration_bounds = array<i64: 2, 1>, scalar_prefetch = 0 : i64, scratch_operands = 0 : i64, tpu.core_type = #tpu.core_type<tc>, window_params = [{transform_indices = @transform_0, window_bounds = array<i64: 1, 10, 18, 72>}, {pipeline_mode = #tpu.pipeline_mode<synchronous>, transform_indices = @transform_1, window_bounds = array<i64: 3, 3, 72, 128>}, {pipeline_mode = #tpu.pipeline_mode<synchronous>, transform_indices = @transform_2, window_bounds = array<i64: 1, 128>}, {pipeline_mode = #tpu.pipeline_mode<synchronous>, transform_indices = @transform_3, window_bounds = array<i64: 1, 128>}, {transform_indices = @transform_4, window_bounds = array<i64: 1, 128, 128>}]} {
    %c8_i32 = arith.constant 8 : i32
    %0 = arith.muli %arg1, %c8_i32 : i32
    %1 = tpu.assume_multiple %0, 8 : i32
    %c0 = arith.constant 0 : index
    %2 = arith.index_cast %1 : i32 to index
    %c0_0 = arith.constant 0 : index
    %c0_1 = arith.constant 0 : index
    %3 = vector.load %arg2[%c0, %2, %c0_0, %c0_1] : memref<1x10x18x72xf32, #tpu.memory_space<vmem>>, vector<1x10x18x72xf32>
    %4 = vector.shape_cast %3 : vector<1x10x18x72xf32> to vector<10x18x72xf32>
    %cst = arith.constant 0.000000e+00 : f32
    %5 = vector.broadcast %cst : f32 to vector<128x128xf32>
    %6 = vector.extract_strided_slice %4 {offsets = [0, 0, 0], sizes = [8, 16, 72], strides = [1, 1, 1]} : vector<10x18x72xf32> to vector<8x16x72xf32>
    %7 = vector.shape_cast %6 : vector<8x16x72xf32> to vector<128x72xf32>
    %c0_2 = arith.constant 0 : index
    %c0_3 = arith.constant 0 : index
    %c0_4 = arith.constant 0 : index
    %c0_5 = arith.constant 0 : index
    %8 = vector.load %arg3[%c0_2, %c0_3, %c0_4, %c0_5] : memref<3x3x72x128xf32, #tpu.memory_space<vmem>>, vector<1x1x72x128xf32>
    %9 = vector.shape_cast %8 : vector<1x1x72x128xf32> to vector<72x128xf32>
    %cst_6 = arith.constant dense<0.000000e+00> : vector<128x128xf32>
    %10 = tpu.matmul %7, %9, %cst_6 {dimension_numbers = #tpu.dot_dimension_numbers<[1], [0], [0], [1], [0, 0, 1, 1], [], []>} : vector<128x72xf32>, vector<72x128xf32>, vector<128x128xf32> -> vector<128x128xf32>
    %11 = arith.addf %5, %10 : vector<128x128xf32>
    %12 = vector.extract_strided_slice %4 {offsets = [0, 1, 0], sizes = [8, 16, 72], strides = [1, 1, 1]} : vector<10x18x72xf32> to vector<8x16x72xf32>
    %13 = vector.shape_cast %12 : vector<8x16x72xf32> to vector<128x72xf32>
    %c0_7 = arith.constant 0 : index
    %c1 = arith.constant 1 : index
    %c0_8 = arith.constant 0 : index
    %c0_9 = arith.constant 0 : index
    %14 = vector.load %arg3[%c0_7, %c1, %c0_8, %c0_9] : memref<3x3x72x128xf32, #tpu.memory_space<vmem>>, vector<1x1x72x128xf32>
    %15 = vector.shape_cast %14 : vector<1x1x72x128xf32> to vector<72x128xf32>
    %cst_10 = arith.constant dense<0.000000e+00> : vector<128x128xf32>
    %16 = tpu.matmul %13, %15, %cst_10 {dimension_numbers = #tpu.dot_dimension_numbers<[1], [0], [0], [1], [0, 0, 1, 1], [], []>} : vector<128x72xf32>, vector<72x128xf32>, vector<128x128xf32> -> vector<128x128xf32>
    %17 = arith.addf %11, %16 : vector<128x128xf32>
    %18 = vector.extract_strided_slice %4 {offsets = [0, 2, 0], sizes = [8, 16, 72], strides = [1, 1, 1]} : vector<10x18x72xf32> to vector<8x16x72xf32>
    %19 = vector.shape_cast %18 : vector<8x16x72xf32> to vector<128x72xf32>
    %c0_11 = arith.constant 0 : index
    %c2 = arith.constant 2 : index
    %c0_12 = arith.constant 0 : index
    %c0_13 = arith.constant 0 : index
    %20 = vector.load %arg3[%c0_11, %c2, %c0_12, %c0_13] : memref<3x3x72x128xf32, #tpu.memory_space<vmem>>, vector<1x1x72x128xf32>
    %21 = vector.shape_cast %20 : vector<1x1x72x128xf32> to vector<72x128xf32>
    %cst_14 = arith.constant dense<0.000000e+00> : vector<128x128xf32>
    %22 = tpu.matmul %19, %21, %cst_14 {dimension_numbers = #tpu.dot_dimension_numbers<[1], [0], [0], [1], [0, 0, 1, 1], [], []>} : vector<128x72xf32>, vector<72x128xf32>, vector<128x128xf32> -> vector<128x128xf32>
    %23 = arith.addf %17, %22 : vector<128x128xf32>
    %24 = vector.extract_strided_slice %4 {offsets = [1, 0, 0], sizes = [8, 16, 72], strides = [1, 1, 1]} : vector<10x18x72xf32> to vector<8x16x72xf32>
    %25 = vector.shape_cast %24 : vector<8x16x72xf32> to vector<128x72xf32>
    %c1_15 = arith.constant 1 : index
    %c0_16 = arith.constant 0 : index
    %c0_17 = arith.constant 0 : index
    %c0_18 = arith.constant 0 : index
    %26 = vector.load %arg3[%c1_15, %c0_16, %c0_17, %c0_18] : memref<3x3x72x128xf32, #tpu.memory_space<vmem>>, vector<1x1x72x128xf32>
    %27 = vector.shape_cast %26 : vector<1x1x72x128xf32> to vector<72x128xf32>
    %cst_19 = arith.constant dense<0.000000e+00> : vector<128x128xf32>
    %28 = tpu.matmul %25, %27, %cst_19 {dimension_numbers = #tpu.dot_dimension_numbers<[1], [0], [0], [1], [0, 0, 1, 1], [], []>} : vector<128x72xf32>, vector<72x128xf32>, vector<128x128xf32> -> vector<128x128xf32>
    %29 = arith.addf %23, %28 : vector<128x128xf32>
    %30 = vector.extract_strided_slice %4 {offsets = [1, 1, 0], sizes = [8, 16, 72], strides = [1, 1, 1]} : vector<10x18x72xf32> to vector<8x16x72xf32>
    %31 = vector.shape_cast %30 : vector<8x16x72xf32> to vector<128x72xf32>
    %c1_20 = arith.constant 1 : index
    %c1_21 = arith.constant 1 : index
    %c0_22 = arith.constant 0 : index
    %c0_23 = arith.constant 0 : index
    %32 = vector.load %arg3[%c1_20, %c1_21, %c0_22, %c0_23] : memref<3x3x72x128xf32, #tpu.memory_space<vmem>>, vector<1x1x72x128xf32>
    %33 = vector.shape_cast %32 : vector<1x1x72x128xf32> to vector<72x128xf32>
    %cst_24 = arith.constant dense<0.000000e+00> : vector<128x128xf32>
    %34 = tpu.matmul %31, %33, %cst_24 {dimension_numbers = #tpu.dot_dimension_numbers<[1], [0], [0], [1], [0, 0, 1, 1], [], []>} : vector<128x72xf32>, vector<72x128xf32>, vector<128x128xf32> -> vector<128x128xf32>
    %35 = arith.addf %29, %34 : vector<128x128xf32>
    %36 = vector.extract_strided_slice %4 {offsets = [1, 2, 0], sizes = [8, 16, 72], strides = [1, 1, 1]} : vector<10x18x72xf32> to vector<8x16x72xf32>
    %37 = vector.shape_cast %36 : vector<8x16x72xf32> to vector<128x72xf32>
    %c1_25 = arith.constant 1 : index
    %c2_26 = arith.constant 2 : index
    %c0_27 = arith.constant 0 : index
    %c0_28 = arith.constant 0 : index
    %38 = vector.load %arg3[%c1_25, %c2_26, %c0_27, %c0_28] : memref<3x3x72x128xf32, #tpu.memory_space<vmem>>, vector<1x1x72x128xf32>
    %39 = vector.shape_cast %38 : vector<1x1x72x128xf32> to vector<72x128xf32>
    %cst_29 = arith.constant dense<0.000000e+00> : vector<128x128xf32>
    %40 = tpu.matmul %37, %39, %cst_29 {dimension_numbers = #tpu.dot_dimension_numbers<[1], [0], [0], [1], [0, 0, 1, 1], [], []>} : vector<128x72xf32>, vector<72x128xf32>, vector<128x128xf32> -> vector<128x128xf32>
    %41 = arith.addf %35, %40 : vector<128x128xf32>
    %42 = vector.extract_strided_slice %4 {offsets = [2, 0, 0], sizes = [8, 16, 72], strides = [1, 1, 1]} : vector<10x18x72xf32> to vector<8x16x72xf32>
    %43 = vector.shape_cast %42 : vector<8x16x72xf32> to vector<128x72xf32>
    %c2_30 = arith.constant 2 : index
    %c0_31 = arith.constant 0 : index
    %c0_32 = arith.constant 0 : index
    %c0_33 = arith.constant 0 : index
    %44 = vector.load %arg3[%c2_30, %c0_31, %c0_32, %c0_33] : memref<3x3x72x128xf32, #tpu.memory_space<vmem>>, vector<1x1x72x128xf32>
    %45 = vector.shape_cast %44 : vector<1x1x72x128xf32> to vector<72x128xf32>
    %cst_34 = arith.constant dense<0.000000e+00> : vector<128x128xf32>
    %46 = tpu.matmul %43, %45, %cst_34 {dimension_numbers = #tpu.dot_dimension_numbers<[1], [0], [0], [1], [0, 0, 1, 1], [], []>} : vector<128x72xf32>, vector<72x128xf32>, vector<128x128xf32> -> vector<128x128xf32>
    %47 = arith.addf %41, %46 : vector<128x128xf32>
    %48 = vector.extract_strided_slice %4 {offsets = [2, 1, 0], sizes = [8, 16, 72], strides = [1, 1, 1]} : vector<10x18x72xf32> to vector<8x16x72xf32>
    %49 = vector.shape_cast %48 : vector<8x16x72xf32> to vector<128x72xf32>
    %c2_35 = arith.constant 2 : index
    %c1_36 = arith.constant 1 : index
    %c0_37 = arith.constant 0 : index
    %c0_38 = arith.constant 0 : index
    %50 = vector.load %arg3[%c2_35, %c1_36, %c0_37, %c0_38] : memref<3x3x72x128xf32, #tpu.memory_space<vmem>>, vector<1x1x72x128xf32>
    %51 = vector.shape_cast %50 : vector<1x1x72x128xf32> to vector<72x128xf32>
    %cst_39 = arith.constant dense<0.000000e+00> : vector<128x128xf32>
    %52 = tpu.matmul %49, %51, %cst_39 {dimension_numbers = #tpu.dot_dimension_numbers<[1], [0], [0], [1], [0, 0, 1, 1], [], []>} : vector<128x72xf32>, vector<72x128xf32>, vector<128x128xf32> -> vector<128x128xf32>
    %53 = arith.addf %47, %52 : vector<128x128xf32>
    %54 = vector.extract_strided_slice %4 {offsets = [2, 2, 0], sizes = [8, 16, 72], strides = [1, 1, 1]} : vector<10x18x72xf32> to vector<8x16x72xf32>
    %55 = vector.shape_cast %54 : vector<8x16x72xf32> to vector<128x72xf32>
    %c2_40 = arith.constant 2 : index
    %c2_41 = arith.constant 2 : index
    %c0_42 = arith.constant 0 : index
    %c0_43 = arith.constant 0 : index
    %56 = vector.load %arg3[%c2_40, %c2_41, %c0_42, %c0_43] : memref<3x3x72x128xf32, #tpu.memory_space<vmem>>, vector<1x1x72x128xf32>
    %57 = vector.shape_cast %56 : vector<1x1x72x128xf32> to vector<72x128xf32>
    %cst_44 = arith.constant dense<0.000000e+00> : vector<128x128xf32>
    %58 = tpu.matmul %55, %57, %cst_44 {dimension_numbers = #tpu.dot_dimension_numbers<[1], [0], [0], [1], [0, 0, 1, 1], [], []>} : vector<128x72xf32>, vector<72x128xf32>, vector<128x128xf32> -> vector<128x128xf32>
    %59 = arith.addf %53, %58 : vector<128x128xf32>
    %c0_45 = arith.constant 0 : index
    %c0_46 = arith.constant 0 : index
    %60 = vector.load %arg4[%c0_45, %c0_46] : memref<1x128xf32, #tpu.memory_space<vmem>>, vector<1x128xf32>
    %61 = vector.broadcast %60 : vector<1x128xf32> to vector<128x128xf32>
    %62 = arith.mulf %59, %61 : vector<128x128xf32>
    %c0_47 = arith.constant 0 : index
    %c0_48 = arith.constant 0 : index
    %63 = vector.load %arg5[%c0_47, %c0_48] : memref<1x128xf32, #tpu.memory_space<vmem>>, vector<1x128xf32>
    %64 = vector.broadcast %63 : vector<1x128xf32> to vector<128x128xf32>
    %65 = arith.addf %62, %64 : vector<128x128xf32>
    %cst_49 = arith.constant 0.000000e+00 : f32
    %66 = vector.broadcast %cst_49 : f32 to vector<128x128xf32>
    %67 = arith.maximumf %65, %66 : vector<128x128xf32>
    %c0_50 = arith.constant 0 : index
    %c0_51 = arith.constant 0 : index
    %c0_52 = arith.constant 0 : index
    %68 = vector.load %arg6[%c0_50, %c0_51, %c0_52] : memref<1x128x128xf32, #tpu.memory_space<vmem>>, vector<1x128x128xf32>
    %69 = vector.shape_cast %68 : vector<1x128x128xf32> to vector<128x128xf32>
    %70 = vector.shape_cast %67 : vector<128x128xf32> to vector<1x128x128xf32>
    tpu.vector_store %arg6[%c0_50, %c0_51, %c0_52], %70 {strides = array<i32>} : memref<1x128x128xf32, #tpu.memory_space<vmem>>, vector<1x128x128xf32>,
    return
  }
  func.func @transform_0(%arg0: i32, %arg1: i32) -> (i32, i32, i32, i32) {
    %c0_i32 = arith.constant 0 : i32
    %c0_i32_0 = arith.constant 0 : i32
    %c0_i32_1 = arith.constant 0 : i32
    %c0_i32_2 = arith.constant 0 : i32
    return %arg0, %c0_i32, %c0_i32_0, %c0_i32_1 : i32, i32, i32, i32
  }
  func.func @transform_1(%arg0: i32, %arg1: i32) -> (i32, i32, i32, i32) {
    %c0_i32 = arith.constant 0 : i32
    %c0_i32_0 = arith.constant 0 : i32
    %c0_i32_1 = arith.constant 0 : i32
    %c0_i32_2 = arith.constant 0 : i32
    %c0_i32_3 = arith.constant 0 : i32
    return %c0_i32, %c0_i32_0, %c0_i32_1, %c0_i32_2 : i32, i32, i32, i32
  }
  func.func @transform_2(%arg0: i32, %arg1: i32) -> (i32, i32) {
    %c0_i32 = arith.constant 0 : i32
    %c0_i32_0 = arith.constant 0 : i32
    %c0_i32_1 = arith.constant 0 : i32
    return %c0_i32, %c0_i32_0 : i32, i32
  }
  func.func @transform_3(%arg0: i32, %arg1: i32) -> (i32, i32) {
    %c0_i32 = arith.constant 0 : i32
    %c0_i32_0 = arith.constant 0 : i32
    %c0_i32_1 = arith.constant 0 : i32
    return %c0_i32, %c0_i32_0 : i32, i32
  }
  func.func @transform_4(%arg0: i32, %arg1: i32) -> (i32, i32, i32) {
    %c0_i32 = arith.constant 0 : i32
    %c0_i32_0 = arith.constant 0 : i32
    return %arg0, %arg1, %c0_i32 : i32, i32, i32
  }
}

</mosaic_0001>

<bundles_post_ra>
// kernel: tpu_custom_call.1
= control target key start
LH: loop header
LB: loop body
LE: loop exit
PB: predicated region body
PF: predicated region fallthrough
CT: control target
= control target key end

     0   :  { %9 = vsyncpa [#allocation3], 0  ;;  %s4437_s0 = inlined_call_operand.vmem [shape: f32[2,10,18,72], index: 0, kind: input, shape index: {}]   ;;  %s4438_s1 = inlined_call_operand.vmem [shape: f32[3,3,72,128], index: 1, kind: input, shape index: {}]   ;;  %s4439_s2 = inlined_call_operand.vmem [shape: f32[1,128], index: 2, kind: input, shape index: {}]   ;;  %s4440_s3 = inlined_call_operand.vmem [shape: f32[1,128], index: 3, kind: input, shape index: {}]   ;;  %s4441_s4 = inlined_call_operand.hbm [shape: f32[2,128,128], index: 4, kind: output, shape index: {}]  }
   0x1   :  { %11 = vsyncpa [#allocation3 + $0x1], 0  ;;  %s3454_s15 = smov 0   ;;  %s3456_s16 = smov 0  }
   0x2   :  { %s3458_s17 = smov 0   ;;  %s3460_s18 = smov 0  }
   0x3   :  { %s3462_s19 = smov 0   ;;  %s3464_s20 = smov 0  }
   0x4 LB: > { %s2172_s21 = sadd.s32 4294967295, %s3424_s20   ;;  %s2173_s22 = sadd.s32 4294967294, %s3424_s20   ;;  %s3424_s20 = sphi %s3464_s20, %s17_s20   ;;  %s3420_s19 = sphi %s3462_s19, %s4459_s19   ;;  %s3416_s18 = sphi %s3460_s18, %s4458_s18   ;;  %s3412_s17 = sphi %s3458_s17, %s4457_s17   ;;  %s3408_s16 = sphi %s3456_s16, %s4456_s16   ;;  %s3404_s15 = sphi %s3454_s15, %s4455_s15  }
   0x5   : > { %s29_s23 = sadd.s32 1, %s3420_s19  ;;  %s127_s24 = sadd.s32 1, %s3412_s17 }
   0x6   : > { %p31_p0 = scmp.ge.s32.totalorder %s29_s23, 2  ;;  %p137_p1 = scmp.ne.s32.totalorder %s3412_s17, %s3408_s16 }
   0x7   : > { %p138_p2 = scmp.eq.s32.totalorder %s2172_s21, 1  ;;  %p143_p3 = scmp.ne.s32.totalorder %s3408_s16, %s3404_s15 }
   0x8   : > { %s4461_s23 = smov (%p31_p0, %s29_s23), 0  ;;  %p144_p5 = scmp.eq.s32.totalorder %s2173_s22, 1 }
   0x9   : > { %p3494_p4 = por %p138_p2, %p137_p1  ;;  %s122_s26 = ssub.s32 %s3420_s19, %s4461_s23 }
   0xa   : > { %p2176_p6 = scmp.ge.s32.totalorder %s3424_s20, 1  ;;  %p125_p7 = scmp.eq.s32.totalorder %s122_s26, 0 }
   0xb   : > { %p3501_p8 = por %p144_p5, %p143_p3  ;;  %p179_p9 = scmp.lt.s32.totalorder %s3424_s20, 3 }
   0xc   : > { %s3507_s28 = scalar_select %p125_p7, %s3412_s17, %s127_s24  }
   0xd   : > { %p180_p10 = pnand %p2176_p6, %p179_p9 }
   0xf   : > { %183 = sbr.rel (%p180_p10) target bundleno = 421 (0x1a5), region = 36 }
  0x16   : > { %v2179_v0 = vld [vmem:[%s4438_s1 + $0x48] sm:$0xff]  ;;  %v2180_v1 = vld [vmem:[%s4438_s1 + $0x50] sm:$0xff]  ;;  %v2270_v2 = vld [vmem:[%s4438_s1 + $0x120] sm:$0xff]  ;;  %p205_p11 = scmp.lt.s32.totalorder %s3416_s18, 1  ;;  %vm277_vm0 = vcmask 1046528   ;;  %vm328_vm1 = vcmask 588800  }
  0x17   : > { %v3006_v3 = vpack.c.bf16 %v2180_v1, %v2179_v0  ;;  %v2271_v4 = vld [vmem:[%s4438_s1 + $0x128] sm:$0xff]  ;;  %v2181_v5 = vld [vmem:[%s4438_s1 + $0x58] sm:$0xff]  ;;  %v2182_v6 = vld [vmem:[%s4438_s1 + $0x60] sm:$0xff]  ;;  %vm683_vm2 = vcmask 1045504   ;;  %s2402_s29 = sshll.u32 %s3416_s18, 11  ;;  %s3426_s10 = smov [#allocation2]  }
  0x18   : > { %v3070_v7 = vpack.c.bf16 %v2271_v4, %v2270_v2  ;;  %v3010_v8 = vpack.c.bf16 %v2182_v6, %v2181_v5  ;;  %v2272_v9 = vld [vmem:[%s4438_s1 + $0x130] sm:$0xff]  ;;  %v2273_v10 = vld [vmem:[%s4438_s1 + $0x138] sm:$0xff]  ;;  %v2183_v11 = vld [vmem:[%s4438_s1 + $0x68] sm:$0xff]  ;;  %s206_s5 = scalar_select %p205_p11, %s3416_s18, 1 }
  0x19   : > { %3007 = vmatprep.subr.bf16.mxu1 %v3006_v3  ;;  %v3074_v12 = vpack.c.bf16 %v2273_v10, %v2272_v9  ;;  %v2184_v13 = vld [vmem:[%s4438_s1 + $0x70] sm:$0xff]  ;;  %v2274_v14 = vld [vmem:[%s4438_s1 + $0x140] sm:$0xff]  ;;  %v2275_v15 = vld [vmem:[%s4438_s1 + $0x148] sm:$0xff]  ;;  %s4381_s18 = scalar_lea.hbm %s4441_s4, %s2402_s29 }
  0x1a   : > { %3071 = vmatprep.subr.bf16.mxu0 %v3070_v7  ;;  %3009 = vmatpush3.bf16.msra.mxu1 %v3006_v3  ;;  %s3288_s12 = smul.u32 240, %s206_s5  ;;  %v3014_v16 = vpack.c.bf16 %v2184_v13, %v2183_v11  ;;  %v2185_v17 = vld [vmem:[%s4438_s1 + $0x78] sm:$0xff]  ;;  %v3078_v18 = vpack.c.bf16 %v2275_v15, %v2274_v14  ;;  %v2186_v19 = vld [vmem:[%s4438_s1 + $0x80] sm:$0xff]  ;;  %v2276_v20 = vld [vmem:[%s4438_s1 + $0x150] sm:$0xff] }
  0x1b   : > { %3073 = vmatpush3.bf16.msra.mxu0 %v3070_v7  ;;  %3011 = vmatprep.subr.bf16.mxu1 %v3010_v8  ;;  %v2277_v21 = vld [vmem:[%s4438_s1 + $0x158] sm:$0xff]  ;;  %v3018_v29 = vpack.c.bf16 %v2186_v19, %v2185_v17  ;;  %v2187_v36 = vld [vmem:[%s4438_s1 + $0x88] sm:$0xff]  ;;  %v2278_v37 = vld [vmem:[%s4438_s1 + $0x160] sm:$0xff] }
  0x1c   : > { %3075 = vmatprep.subr.bf16.mxu0 %v3074_v12  ;;  %s3562_s7 = scalar_lea.vmem %s4437_s0, %s3288_s12  ;;  %v3082_v31 = vpack.c.bf16 %v2277_v21, %v2276_v20  ;;  %v244_v39 = vld [vmem:[%s4438_s1] sm:$0xff]  ;;  %v245_v40 = vld [vmem:[%s4438_s1 + $0x8] sm:$0xff]  ;;  %v2296_v45 = vld [vmem:[%s4438_s1 + $0x170] sm:$0xff]  ;;  %s202_s12 = sand.u32 1, %s3408_s16  }
  0x1d   : > { %v3565_v22 = vld [vmem:[%s3562_s7] sm:$0xff]  ;;  %v3568_v23 = vld [vmem:[%s3562_s7 + $0x8] sm:$0xff]  ;;  %v3571_v24 = vld [vmem:[%s3562_s7 + $0x18] sm:$0xff]  ;;  %v3022_v50 = vpack.c.bf16 %v245_v40, %v244_v39  ;;  %s2177_s24 = sshll.u32 %s202_s12, 7  ;;  %s4391_s8 = scalar_lea.sflag [#allocation3], %s202_s12 }
  0x1e   : > { %3013 = vmatpush3.bf16.msra.mxu1 %v3010_v8  ;;  %v278_v25 = vrot.slane %v3565_v22, 1  ;;  %v279_v26 = vrot.slane %v3568_v23, 1  ;;  %v3576_v27 = vld [vmem:[%s3562_s7 + $0x20] sm:$0xff]  ;;  %v283_v28 = vrot.slane %v3571_v24, 1  ;;  %v3584_v34 = vld [vmem:[%s3562_s7 + $0x10] sm:$0x3] }
  0x1f   : > { %3077 = vmatpush3.bf16.msra.mxu0 %v3074_v12  ;;  %3015 = vmatprep.subr.bf16.mxu1 %v3014_v16  ;;  %v284_v30 = vrot.slane %v3576_v27, 1  ;;  %v3588_v35 = vld [vmem:[%s3562_s7 + $0x28] sm:$0x3]  ;;  %v281_v38 = vrot.slane %v3584_v34, 1  ;;  %v3605_v42 = vld [vmem:[%s3562_s7 + $0x30] sm:$0xff]  ;;  %v3608_v43 = vld [vmem:[%s3562_s7 + $0x38] sm:$0xff] }
  0x20   : > { %3079 = vmatprep.subr.bf16.mxu0 %v3078_v18  ;;  %v280_v32 = vsel %vm277_vm0, %v278_v25, %v279_v26  ;;  %v286_v41 = vrot.slane %v3588_v35, 1  ;;  %v2295_v44 = vld [vmem:[%s4438_s1 + $0x168] sm:$0xff]  ;;  %v3617_v46 = vld [vmem:[%s3562_s7 + $0x40] sm:$0x3]  ;;  %v3623_v48 = vld [vmem:[%s3562_s7 + $0x50] sm:$0xff]  ;;  %v288_v51 = vrot.slane %v3605_v42, 1 }
  0x21   : > { %2646 = vmatprep.mubr.msk.f32.mxu1 %vm328_vm1, %v280_v32  ;;  %v285_v33 = vsel %vm277_vm0, %v283_v28, %v284_v30  ;;  %v3620_v47 = vld [vmem:[%s3562_s7 + $0x48] sm:$0xff]  ;;  %v282_v49 = vsel %vm277_vm0, %v279_v26, %v281_v38  ;;  %v289_v52 = vrot.slane %v3608_v43, 1  ;;  %v3086_v54 = vpack.c.bf16 %v2296_v45, %v2295_v44  ;;  %v246_v56 = vld [vmem:[%s4438_s1 + $0x10] sm:$0xff]  ;;  %v247_v57 = vld [vmem:[%s4438_s1 + $0x18] sm:$0xff]  ;;  %s4335_s26 = scalar_lea.vmem [#allocation2], %s2177_s24 }
  0x22   : > { %3017 = vmatpush3.bf16.msra.mxu1 %v3014_v16  ;;  %2814 = vmatprep.mubr.msk.f32.mxu0 %vm328_vm1, %v285_v33  ;;  %v287_v53 = vsel %vm277_vm0, %v284_v30, %v286_v41  ;;  %v291_v55 = vrot.slane %v3617_v46, 1  ;;  %v293_v58 = vrot.slane %v3620_v47, 1  ;;  %v294_v59 = vrot.slane %v3623_v48, 1  ;;  %v2297_v60 = vld [vmem:[%s4438_s1 + $0x178] sm:$0xff]  ;;  %v2298_v62 = vld [vmem:[%s4438_s1 + $0x180] sm:$0xff]  ;;  %v3652_v0 = vld [vmem:[%s3562_s7 + $0x68] sm:$0xff] }
  0x23   : > { %3081 = vmatpush3.bf16.msra.mxu0 %v3078_v18  ;;  %3019 = vmatprep.subr.bf16.mxu1 %v3018_v29  ;;  %v3642_v61 = vld [vmem:[%s3562_s7 + $0x58] sm:$0x3]  ;;  %v3649_v63 = vld [vmem:[%s3562_s7 + $0x60] sm:$0xff]  ;;  %v3656_v1 = vsel %vm277_vm0, %v288_v51, %v289_v52  ;;  %v3026_v3 = vpack.c.bf16 %v247_v57, %v246_v56  ;;  %v3663_v5 = vld [vmem:[%s3562_s7 + $0x70] sm:$0x3]  ;;  %v3090_v7 = vpack.c.bf16 %v2298_v62, %v2297_v60  ;;  %v299_v9 = vrot.slane %v3652_v0, 1 }
  0x24   : > { %3083 = vmatprep.subr.bf16.mxu0 %v3082_v31  ;;  %v3659_v2 = vsel %vm277_vm0, %v289_v52, %v291_v55  ;;  %v296_v4 = vrot.slane %v3642_v61, 1  ;;  %v3667_v6 = vsel %vm277_vm0, %v293_v58, %v294_v59  ;;  %v298_v8 = vrot.slane %v3649_v63, 1  ;;  %v248_v10 = vld [vmem:[%s4438_s1 + $0x20] sm:$0xff]  ;;  %v249_v11 = vld [vmem:[%s4438_s1 + $0x28] sm:$0xff]  ;;  %v2300_v13 = vld [vmem:[%s4438_s1 + $0x190] sm:$0xff]  ;;  %s2097_s30 = sshll.u32 %s4335_s26, 4  ;;  %s4383_s30 = int_to_ptr.vmem [resolvable:$true] %s2097_s30 }
  0x25   : > { %v2299_v12 = vld [vmem:[%s4438_s1 + $0x188] sm:$0xff]  ;;  %v3687_v14 = vld [vmem:[%s3562_s7 + $0x78] sm:$0xff]  ;;  %v3690_v15 = vld [vmem:[%s3562_s7 + $0x80] sm:$0xff]  ;;  %v301_v17 = vrot.slane %v3663_v5, 1  ;;  %v3030_v18 = vpack.c.bf16 %v249_v11, %v248_v10  ;;  %v684_v51 = vrot.slane %v3565_v22, 2  ;;  %v685_v52 = vrot.slane %v3568_v23, 2 }
  0x26   : > { %3021 = vmatpush3.bf16.msra.mxu1 %v3018_v29  ;;  %v3699_v16 = vsel %vm277_vm0, %v294_v59, %v296_v4  ;;  %v3703_v19 = vld [vmem:[%s3562_s7 + $0x88] sm:$0x3]  ;;  %v3706_v20 = vsel %vm277_vm0, %v298_v8, %v299_v9  ;;  %v3094_v21 = vpack.c.bf16 %v2300_v13, %v2299_v12  ;;  %v303_v25 = vrot.slane %v3687_v14, 1  ;;  %v3711_v28 = vld [vmem:[%s3562_s7 + $0x90] sm:$0xff]  ;;  %v251_v30 = vld [vmem:[%s4438_s1 + $0x38] sm:$0xff]  ;;  %s3346_s9 = scalar_lea.vmem %s4383_s30, 2048 }
  0x27   : > { %3085 = vmatpush3.bf16.msra.mxu0 %v3082_v31  ;;  %2644 = vmatprep.subr.mxu1 %v2187_v36  ;;  %v304_v26 = vrot.slane %v3690_v15, 1  ;;  %v250_v29 = vld [vmem:[%s4438_s1 + $0x30] sm:$0xff]  ;;  %v3722_v31 = vld [vmem:[%s3562_s7 + $0x98] sm:$0xff]  ;;  %v306_v38 = vrot.slane %v3703_v19, 1  ;;  %v3742_v40 = vld [vmem:[%s3562_s7 + $0xa0] sm:$0x3]  ;;  %p3347_p12 = scmp.ne.s32.totalorder %s4383_s30, %s3346_s9 }
  0x28   : > { %2812 = vmatprep.subr.mxu0 %v2278_v37  ;;  %v2301_v32 = vld [vmem:[%s4438_s1 + $0x198] sm:$0xff]  ;;  %v3034_v39 = vpack.c.bf16 %v251_v30, %v250_v29  ;;  %v3745_v41 = vld [vmem:[%s3562_s7 + $0xa8] sm:$0xff]  ;;  %v3748_v44 = vld [vmem:[%s3562_s7 + $0xb0] sm:$0xff]  ;;  %v308_v45 = vrot.slane %v3711_v28, 1 }
  0x29   : > { %v314_v55 = vrot.slane %v3748_v44, 1  ;;  %v3767_v56 = vld [vmem:[%s3562_s7 + $0xb8] sm:$0x3]  ;;  %v3775_v58 = vsel %vm277_vm0, %v304_v26, %v306_v38  ;;  %v252_v59 = vld [vmem:[%s4438_s1 + $0x40] sm:$0xff]  ;;  %v2303_v60 = vld [vmem:[%s4438_s1 + $0x1a8] sm:$0xff]  ;;  %p3348_p13 = pnand %p3347_p12, %p3494_p4 }
  0x2a   : > { %2645 = vmatpush3.msra.mxu1 %v2187_v36  ;;  %v687_v36 = vrot.slane %v3584_v34, 2  ;;  %v3751_v34 = vsel %vm277_vm0, %v303_v25, %v304_v26  ;;  %v3770_v57 = vld [vmem:[%s3562_s7 + $0xd8] sm:$0xff]  ;;  %v3784_v62 = vld [vmem:[%s3562_s7 + $0xc0] sm:$0xff]  ;;  %v3809_v13 = vld [vmem:[%s3562_s7 + $0xc8] sm:$0xff]  ;;  %v316_v29 = vrot.slane %v3767_v56, 1 }
  0x2b   : > { %2813 = vmatpush3.msra.mxu0 %v2278_v37  ;;  %2647 = vmatmul.mubr.msk.f32.vlgmr.msra.gmra.mrb[0].mxu1 %vm328_vm1, %v282_v49  ;;  %v3738_v37 = vsel %vm277_vm0, %v299_v9, %v301_v17  ;;  %v309_v49 = vrot.slane %v3722_v31, 1  ;;  %v2220_v9 = vld [vmem:[%s4438_s1 + $0x90] sm:$0xff]  ;;  %v2221_v10 = vld [vmem:[%s4438_s1 + $0x98] sm:$0xff]  ;;  %v1823_v11 = vrot.slane %v3770_v57, 2  ;;  %v3804_v12 = vld [vmem:[%s3562_s7 + $0xe0] sm:$0xff]  ;;  %p3349_p0 = pneg %p3348_p13 }
  0x2c   : > { %3023 = vmatprep.subr.bf16.mxu1 %v3022_v50  ;;  %2815 = vmatmul.mubr.msk.f32.vlgmr.msra.gmra.mrb[0].mxu0 %vm328_vm1, %v287_v53  ;;  %v3790_v4 = vsel %vm683_vm2, %v685_v52, %v687_v36  ;;  %v2320_v17 = vld [vmem:[%s4438_s1 + $0x1b0] sm:$0xff]  ;;  %v1824_v30 = vrot.slane %v3804_v12, 2 }
  0x2d   : > { %3087 = vmatprep.subr.bf16.mxu0 %v3086_v54  ;;  %3025 = vmatpush3.bf16.msra.mxu1 %v3022_v50  ;;  %v3794_v8 = vsel %vm277_vm0, %v308_v45, %v309_v49  ;;  %v1105_v45 = vrot.slane %v3784_v62, 1 }
  0x2e   : > { %3089 = vmatpush3.bf16.msra.mxu0 %v3086_v54  ;;  %2649 = vmatprep.mubr.msk.f32.mxu1 %vm328_vm1, %v285_v33  ;;  %v2302_v33 = vld [vmem:[%s4438_s1 + $0x1a0] sm:$0xff]  ;;  %v313_v54 = vrot.slane %v3745_v41, 1 }
  0x2f   : > { %2817 = vmatprep.mubr.msk.f32.mxu0 %vm328_vm1, %v3656_v1  ;;  %2650 = vmatmul.mubr.msk.f32.gmra.mrb[2].mxu1 %vm328_vm1, %v287_v53  ;;  %v3098_v50 = vpack.c.bf16 %v2302_v33, %v2301_v32  ;;  %v311_v53 = vrot.slane %v3742_v40, 1  ;;  %v243_v32 = vld [vmem:[%s3562_s7 + $0xe8] sm:$0x3]  ;;  %v3038_v33 = vpack.c.bf16 %v2221_v10, %v2220_v9  ;;  %v689_v9 = vrot.slane %v3571_v24, 2 }
  0x30   : > { %2818 = vmatmul.mubr.msk.f32.gmra.mrb[2].mxu0 %vm328_vm1, %v3659_v2  ;;  %2652 = vmatprep.mubr.msk.f32.mxu1 %vm328_vm1, %v3656_v1  ;;  %v3826_v26 = vsel %vm277_vm0, %v313_v54, %v314_v55  ;;  %v1646_v38 = vrot.slane %v243_v32, 1  ;;  %v690_v10 = vrot.slane %v3576_v27, 2 }
  0x31   : > { %3027 = vmatprep.subr.bf16.mxu1 %v3026_v3  ;;  %2820 = vmatprep.mubr.msk.f32.mxu0 %vm328_vm1, %v3667_v6  ;;  %v3823_v25 = vsel %vm277_vm0, %v309_v49, %v311_v53  ;;  %v1106_v49 = vrot.slane %v3809_v13, 1 }
  0x32   : > { %3091 = vmatprep.subr.bf16.mxu0 %v3090_v7  ;;  %3029 = vmatpush3.bf16.msra.mxu1 %v3026_v3  ;;  %v3787_v3 = vsel %vm683_vm2, %v684_v51, %v685_v52  ;;  %v3842_v52 = vsel %vm683_vm2, %v1823_v11, %v1824_v30 }
  0x33   : > { %2653 = vmatmul.mubr.msk.f32.gmra.mrb[4].mxu1 %vm328_vm1, %v3659_v2  ;;  %3093 = vmatpush3.bf16.msra.mxu0 %v3090_v7  ;;  %v1643_v7 = vrot.slane %v3770_v57, 1  ;;  %4446 = vst [vmem:[#allocation6_spill] sm:$0xff] %v3842_v52 }
  0x34   : > { %2821 = vmatmul.mubr.msk.f32.gmra.mrb[4].mxu0 %vm328_vm1, %v3699_v16  ;;  %2655 = vmatprep.mubr.msk.f32.mxu1 %vm328_vm1, %v3667_v6 }
  0x35   : > { %2823 = vmatprep.mubr.msk.f32.mxu0 %vm328_vm1, %v3706_v20  ;;  %3031 = vmatprep.subr.bf16.mxu1 %v3030_v18 }
  0x36   : > { %3095 = vmatprep.subr.bf16.mxu0 %v3094_v21  ;;  %3033 = vmatpush3.bf16.msra.mxu1 %v3030_v18  ;;  %v2321_v18 = vld [vmem:[%s4438_s1 + $0x1b8] sm:$0xff] }
  0x37   : > { %2656 = vmatmul.mubr.msk.f32.gmra.mrb[6].mxu1 %vm328_vm1, %v3699_v16  ;;  %3097 = vmatpush3.bf16.msra.mxu0 %v3094_v21  ;;  %v1644_v21 = vrot.slane %v3804_v12, 1  ;;  %v3102_v51 = vpack.c.bf16 %v2321_v18, %v2320_v17  ;;  %v3880_v17 = vsel %vm683_vm2, %v689_v9, %v690_v10  ;;  %v694_v18 = vrot.slane %v3605_v42, 2 }
  0x38   : > { %2824 = vmatmul.mubr.msk.f32.gmra.mrb[6].mxu0 %vm328_vm1, %v3738_v37  ;;  %2658 = vmatprep.mubr.msk.f32.mxu1 %vm328_vm1, %v3706_v20 }
  0x39   : > { %2826 = vmatprep.mubr.msk.f32.mxu0 %vm328_vm1, %v3751_v34  ;;  %3035 = vmatprep.subr.bf16.mxu1 %v3034_v39  ;;  %v3834_v36 = vsel %vm277_vm0, %v1643_v7, %v1644_v21  ;;  %v3847_v53 = vsel %vm277_vm0, %v1644_v21, %v1646_v38  ;;  %v3863_v7 = vsel %vm277_vm0, %v1105_v45, %v1106_v49  ;;  %v695_v21 = vrot.slane %v3608_v43, 2 }
  0x3a   : > { %3099 = vmatprep.subr.bf16.mxu0 %v3098_v50  ;;  %3037 = vmatpush3.bf16.msra.mxu1 %v3034_v39  ;;  %4445 = vst [vmem:[#allocation5_spill] sm:$0xff] %v3834_v36  ;;  %v1826_v39 = vrot.slane %v243_v32, 2  ;;  %4447 = vst [vmem:[#allocation7_spill] sm:$0xff] %v3847_v53  ;;  %v2323_v32 = vld [vmem:[%s4438_s1 + $0x1c8] sm:$0xff]  ;;  %v720_v53 = vrot.slane %v3748_v44, 2 }
  0x3b   : > { %2659 = vmatmul.mubr.msk.f32.gmra.mrb[8].mxu1 %vm328_vm1, %v3738_v37  ;;  %3101 = vmatpush3.bf16.msra.mxu0 %v3098_v50  ;;  %v3839_v50 = vld [vmem:[%s3562_s7 + $0xd0] sm:$0x3]  ;;  %s3350_s7 = sshll.u32 %s3426_s10, 4  ;;  %s3351_s7 = int_to_ptr.vmem [resolvable:$false] %s3350_s7 }
  0x3c   : > { %2827 = vmatmul.mubr.msk.f32.gmra.mrb[8].mxu0 %vm328_vm1, %v3775_v58  ;;  %2661 = vmatprep.mubr.msk.f32.mxu1 %vm328_vm1, %v3751_v34  ;;  %v3850_v54 = vsel %vm683_vm2, %v1824_v30, %v1826_v39  ;;  %v2322_v30 = vld [vmem:[%s4438_s1 + $0x1c0] sm:$0xff]  ;;  %v697_v39 = vrot.slane %v3617_v46, 2  ;;  %v2225_v46 = vld [vmem:[%s4438_s1 + $0xb8] sm:$0xff]  ;;  %s3352_s11 = scalar_lea.vmem %s3351_s7, 4096  ;;  %p3353_p1 = scmp.lt.s32.totalorder %s4383_s30, %s3351_s7 }
  0x3d   : > { %2829 = vmatprep.mubr.msk.f32.mxu0 %vm328_vm1, %v3794_v8  ;;  %2686 = vmatprep.subr.mxu1 %v252_v59  ;;  %4448 = vst [vmem:[#allocation8_spill] sm:$0xff] %v3850_v54  ;;  %v3106_v9 = vpack.c.bf16 %v2323_v32, %v2322_v30  ;;  %v2224_v54 = vld [vmem:[%s4438_s1 + $0xb0] sm:$0xff]  ;;  %v2227_v30 = vld [vmem:[%s4438_s1 + $0xc8] sm:$0xff]  ;;  %p3354_p2 = scmp.lt.s32.totalorder %s3352_s11, %s3346_s9 }
  0x3e   : > { %2854 = vmatprep.subr.mxu0 %v2303_v60  ;;  %2687 = vmatpush3.msra.mxu1 %v252_v59  ;;  %v3859_v59 = vsel %vm277_vm0, %v314_v55, %v316_v29  ;;  %v692_v55 = vrot.slane %v3588_v35, 2  ;;  %v2222_v35 = vld [vmem:[%s4438_s1 + $0xa0] sm:$0xff]  ;;  %v2223_v29 = vld [vmem:[%s4438_s1 + $0xa8] sm:$0xff] }
  0x3f   : > { %2662 = vmatmul.mubr.msk.f32.gmra.mrb[10].mxu1 %vm328_vm1, %v3775_v58  ;;  %2855 = vmatpush3.msra.mxu0 %v2303_v60  ;;  %v1108_v60 = vrot.slane %v3839_v50, 1  ;;  %v3042_v45 = vpack.c.bf16 %v2223_v29, %v2222_v35  ;;  %v704_v35 = vrot.slane %v3649_v63, 2  ;;  %v705_v29 = vrot.slane %v3652_v0, 2  ;;  %v2327_v32 = vld [vmem:[%s4438_s1 + $0x1e8] sm:$0xff]  ;;  %p3355_p3 = por %p3354_p2, %p3353_p1 }
  0x40   : > { %2830 = vmatmul.mubr.msk.f32.gmra.mrb[10].mxu0 %vm328_vm1, %v3823_v25  ;;  %2664 = vmatprep.mubr.msk.f32.mxu1 %vm328_vm1, %v3794_v8  ;;  %v3905_v38 = vsel %vm683_vm2, %v690_v10, %v692_v55  ;;  %v2325_v10 = vld [vmem:[%s4438_s1 + $0x1d8] sm:$0xff]  ;;  %v3932_v55 = vsel %vm683_vm2, %v695_v21, %v697_v39 }
  0x41   : > { %2832 = vmatprep.mubr.msk.f32.mxu0 %vm328_vm1, %v3826_v26  ;;  %3039 = vmatprep.subr.bf16.mxu1 %v3038_v33  ;;  %v3877_v11 = vsel %vm277_vm0, %v1106_v49, %v1108_v60  ;;  %v699_v49 = vrot.slane %v3620_v47, 2  ;;  %v3913_v60 = vsel %vm683_vm2, %v694_v18, %v695_v21  ;;  %v702_v18 = vrot.slane %v3642_v61, 2  ;;  %v2226_v61 = vld [vmem:[%s4438_s1 + $0xc0] sm:$0xff]  ;;  %p3356_p5 = pnand %p3355_p3, %p3349_p0 }
  0x42   : > { %3103 = vmatprep.subr.bf16.mxu0 %v3102_v51  ;;  %4449 = vst [vmem:[#allocation9_spill] sm:$0xff] %v3877_v11  ;;  %v3050_v52 = vpack.c.bf16 %v2227_v30, %v2226_v61  ;;  %v2345_v61 = vld [vmem:[%s4438_s1 + $0x1f8] sm:$0xff]  ;;  %v2346_v30 = vld [vmem:[%s4438_s1 + $0x200] sm:$0xff] }
  0x43   : > { %2665 = vmatmul.mubr.msk.f32.gmra.mrb[12].mxu1 %vm328_vm1, %v3823_v25 }
  0x44   : > { %2833 = vmatmul.mubr.msk.f32.gmra.mrb[12].mxu0 %vm328_vm1, %v3859_v59  ;;  %2667 = vmatprep.mubr.msk.f32.mxu1 %vm328_vm1, %v3826_v26 }
  0x45   : > { %2835 = vmatprep.mubr.msk.f32.mxu0 %vm328_vm1, %v3863_v7 }
  0x47   : > { %2668 = vmatmul.mubr.msk.f32.gmra.mrb[14].mxu1 %vm328_vm1, %v3859_v59 }
  0x48   : > { %2836 = vmatmul.mubr.msk.f32.gmra.mrb[14].mxu0 %vm328_vm1, %v3877_v11  ;;  %2688 = vmatprep.mubr.msk.f32.mxu1 %vm328_vm1, %v3565_v22  ;;  %v700_v22 = vrot.slane %v3623_v48, 2  ;;  %v3118_v11 = vpack.c.bf16 %v2346_v30, %v2345_v61  ;;  %v2250_v30 = vld [vmem:[%s4438_s1 + $0x100] sm:$0xff] }
  0x49   : > { %2856 = vmatprep.mubr.msk.f32.mxu0 %vm328_vm1, %v3880_v17 }
  0x4a   : > { %v3963_v39 = vsel %vm683_vm2, %v700_v22, %v702_v18  ;;  %v714_v18 = vrot.slane %v3711_v28, 2 }
  0x4b   : > { %2689 = vmatmul.mubr.msk.f32.vlgmr.msra.gmra.mrb[0].mxu1 %vm328_vm1, %v3568_v23  ;;  %v2324_v23 = vld [vmem:[%s4438_s1 + $0x1d0] sm:$0xff] }
  0x4c   : > { %2857 = vmatmul.mubr.msk.f32.vlgmr.msra.gmra.mrb[0].mxu0 %vm328_vm1, %v3905_v38  ;;  %3041 = vmatpush3.bf16.msra.mxu1 %v3038_v33  ;;  %v3938_v33 = vsel %vm683_vm2, %v699_v49, %v700_v22  ;;  %v3110_v21 = vpack.c.bf16 %v2325_v10, %v2324_v23  ;;  %v707_v49 = vrot.slane %v3663_v5, 2  ;;  %v709_v23 = vrot.slane %v3687_v14, 2 }
  0x4d   : > { %3105 = vmatpush3.bf16.msra.mxu0 %v3102_v51  ;;  %2691 = vmatprep.mubr.msk.f32.mxu1 %vm328_vm1, %v3571_v24  ;;  %v3046_v51 = vpack.c.bf16 %v2225_v46, %v2224_v54  ;;  %v2326_v54 = vld [vmem:[%s4438_s1 + $0x1e0] sm:$0xff]  ;;  %v3967_v46 = vsel %vm683_vm2, %v704_v35, %v705_v29  ;;  %v710_v10 = vrot.slane %v3690_v15, 2  ;;  %v712_v22 = vrot.slane %v3703_v19, 2  ;;  %v2245_v19 = vld [vmem:[%s4438_s1 + $0xd8] sm:$0xff] }
  0x4e   : > { %2859 = vmatprep.mubr.msk.f32.mxu0 %vm328_vm1, %v3913_v60  ;;  %3043 = vmatprep.subr.bf16.mxu1 %v3042_v45  ;;  %v3980_v5 = vsel %vm683_vm2, %v705_v29, %v707_v49  ;;  %v715_v35 = vrot.slane %v3722_v31, 2  ;;  %v2228_v29 = vld [vmem:[%s4438_s1 + $0xd0] sm:$0xff] }
  0x4f   : > { %2692 = vmatmul.mubr.msk.f32.gmra.mrb[2].mxu1 %vm328_vm1, %v3576_v27  ;;  %3107 = vmatprep.subr.bf16.mxu0 %v3106_v9 }
  0x50   : > { %2860 = vmatmul.mubr.msk.f32.gmra.mrb[2].mxu0 %vm328_vm1, %v3932_v55  ;;  %2694 = vmatprep.mubr.msk.f32.mxu1 %vm328_vm1, %v3605_v42  ;;  %v4019_v49 = vsel %vm683_vm2, %v714_v18, %v715_v35  ;;  %v1288_v18 = vrot.slane %v3839_v50, 2  ;;  %v2247_v50 = vld [vmem:[%s4438_s1 + $0xe8] sm:$0xff] }
  0x51   : > { %2862 = vmatprep.mubr.msk.f32.mxu0 %vm328_vm1, %v3938_v33  ;;  %3045 = vmatpush3.bf16.msra.mxu1 %v3042_v45  ;;  %v3114_v45 = vpack.c.bf16 %v2327_v32, %v2326_v54  ;;  %v4015_v54 = vsel %vm683_vm2, %v710_v10, %v712_v22  ;;  %v717_v32 = vrot.slane %v3742_v40, 2  ;;  %v1286_v22 = vrot.slane %v3809_v13, 2 }
  0x52   : > { %3109 = vmatpush3.bf16.msra.mxu0 %v3106_v9  ;;  %3047 = vmatprep.subr.bf16.mxu1 %v3046_v51  ;;  %v3984_v9 = vsel %vm683_vm2, %v709_v23, %v710_v10  ;;  %v719_v23 = vrot.slane %v3745_v41, 2 }
  0x53   : > { %2695 = vmatmul.mubr.msk.f32.gmra.mrb[4].mxu1 %vm328_vm1, %v3608_v43  ;;  %3111 = vmatprep.subr.bf16.mxu0 %v3110_v21  ;;  %v4032_v40 = vsel %vm683_vm2, %v715_v35, %v717_v32  ;;  %v2349_v32 = vld [vmem:[%s4438_s1 + $0x218] sm:$0xff] }
  0x54   : > { %2863 = vmatmul.mubr.msk.f32.gmra.mrb[4].mxu0 %vm328_vm1, %v3963_v39  ;;  %2697 = vmatprep.mubr.msk.f32.mxu1 %vm328_vm1, %v3620_v47  ;;  %v4036_v10 = vsel %vm683_vm2, %v719_v23, %v720_v53 }
  0x55   : > { %2865 = vmatprep.mubr.msk.f32.mxu0 %vm328_vm1, %v3967_v46  ;;  %3049 = vmatpush3.bf16.msra.mxu1 %v3046_v51  ;;  %v2246_v51 = vld [vmem:[%s4438_s1 + $0xe0] sm:$0xff] }
  0x56   : > { %3113 = vmatpush3.bf16.msra.mxu0 %v3110_v21  ;;  %3051 = vmatprep.subr.bf16.mxu1 %v3050_v52  ;;  %v2328_v21 = vld [vmem:[%s4438_s1 + $0x1f0] sm:$0xff]  ;;  %v3054_v36 = vpack.c.bf16 %v2246_v51, %v2245_v19  ;;  %v2347_v19 = vld [vmem:[%s4438_s1 + $0x208] sm:$0xff] }
  0x57   : > { %2698 = vmatmul.mubr.msk.f32.gmra.mrb[6].mxu1 %vm328_vm1, %v3623_v48  ;;  %3115 = vmatprep.subr.bf16.mxu0 %v3114_v45  ;;  %v2348_v51 = vld [vmem:[%s4438_s1 + $0x210] sm:$0xff] }
  0x58   : > { %2866 = vmatmul.mubr.msk.f32.gmra.mrb[6].mxu0 %vm328_vm1, %v3980_v5  ;;  %2700 = vmatprep.mubr.msk.f32.mxu1 %vm328_vm1, %v3649_v63  ;;  %v3122_v61 = vpack.c.bf16 %v2348_v51, %v2347_v19  ;;  %v2353_v19 = vld [vmem:[%s4438_s1 + $0x238] sm:$0xff] }
  0x59   : > { %2868 = vmatprep.mubr.msk.f32.mxu0 %vm328_vm1, %v3984_v9  ;;  %3053 = vmatpush3.bf16.msra.mxu1 %v3050_v52  ;;  %v722_v52 = vrot.slane %v3767_v56, 2 }
  0x5a   : > { %3117 = vmatpush3.bf16.msra.mxu0 %v3114_v45  ;;  %2728 = vmatprep.subr.mxu1 %v2228_v29  ;;  %v1285_v45 = vrot.slane %v3784_v62, 2 }
  0x5b   : > { %2701 = vmatmul.mubr.msk.f32.gmra.mrb[8].mxu1 %vm328_vm1, %v3652_v0  ;;  %2896 = vmatprep.subr.mxu0 %v2328_v21  ;;  %v4049_v56 = vsel %vm683_vm2, %v720_v53, %v722_v52  ;;  %v4064_v53 = vsel %vm683_vm2, %v1286_v22, %v1288_v18  ;;  %v2251_v52 = vld [vmem:[%s4438_s1 + $0x108] sm:$0xff]  ;;  %v2253_v18 = vld [vmem:[%s4438_s1 + $0x118] sm:$0xff] }
  0x5c   : > { %2869 = vmatmul.mubr.msk.f32.gmra.mrb[8].mxu0 %vm328_vm1, %v4015_v54  ;;  %2703 = vmatprep.mubr.msk.f32.mxu1 %vm328_vm1, %v3687_v14  ;;  %v4053_v35 = vsel %vm683_vm2, %v1285_v45, %v1286_v22 }
  0x5d   : > { %2871 = vmatprep.mubr.msk.f32.mxu0 %vm328_vm1, %v4019_v49  ;;  %2729 = vmatpush3.msra.mxu1 %v2228_v29  ;;  %v2248_v29 = vld [vmem:[%s4438_s1 + $0xf0] sm:$0xff] }
  0x5e   : > { %2897 = vmatpush3.msra.mxu0 %v2328_v21  ;;  %3055 = vmatprep.subr.bf16.mxu1 %v3054_v36  ;;  %v3058_v21 = vpack.c.bf16 %v2248_v29, %v2247_v50  ;;  %v2370_v50 = vld [vmem:[%s4438_s1 + $0x240] sm:$0xff]  ;;  %v2371_v29 = vld [vmem:[%s4438_s1 + $0x248] sm:$0xff] }
  0x5f   : > { %2704 = vmatmul.mubr.msk.f32.gmra.mrb[10].mxu1 %vm328_vm1, %v3690_v15  ;;  %3119 = vmatprep.subr.bf16.mxu0 %v3118_v11  ;;  %v3134_v51 = vpack.c.bf16 %v2371_v29, %v2370_v50 }
  0x60   : > { %2872 = vmatmul.mubr.msk.f32.gmra.mrb[10].mxu0 %vm328_vm1, %v4032_v40  ;;  %2706 = vmatprep.mubr.msk.f32.mxu1 %vm328_vm1, %v3711_v28 }
  0x61   : > { %2874 = vmatprep.mubr.msk.f32.mxu0 %vm328_vm1, %v4036_v10 }
  0x63   : > { %2707 = vmatmul.mubr.msk.f32.gmra.mrb[12].mxu1 %vm328_vm1, %v3722_v31 }
  0x64   : > { %2875 = vmatmul.mubr.msk.f32.gmra.mrb[12].mxu0 %vm328_vm1, %v4049_v56  ;;  %2709 = vmatprep.mubr.msk.f32.mxu1 %vm328_vm1, %v3745_v41 }
  0x65   : > { %2877 = vmatprep.mubr.msk.f32.mxu0 %vm328_vm1, %v4053_v35 }
  0x67   : > { %2710 = vmatmul.mubr.msk.f32.gmra.mrb[14].mxu1 %vm328_vm1, %v3748_v44 }
  0x68   : > { %2878 = vmatmul.mubr.msk.f32.gmra.mrb[14].mxu0 %vm328_vm1, %v4064_v53  ;;  %2730 = vmatprep.mubr.msk.f32.mxu1 %vm328_vm1, %v3787_v3  ;;  %v2249_v3 = vld [vmem:[%s4438_s1 + $0xf8] sm:$0xff] }
  0x69   : > { %2898 = vmatprep.mubr.msk.f32.mxu0 %vm328_vm1, %v3605_v42  ;;  %v3062_v23 = vpack.c.bf16 %v2250_v30, %v2249_v3  ;;  %v2374_v3 = vld [vmem:[%s4438_s1 + $0x260] sm:$0xff]  ;;  %v2375_v30 = vld [vmem:[%s4438_s1 + $0x268] sm:$0xff] }
  0x6b   : > { %2731 = vmatmul.mubr.msk.f32.vlgmr.msra.gmra.mrb[0].mxu1 %vm328_vm1, %v3790_v4  ;;  %v2350_v4 = vld [vmem:[%s4438_s1 + $0x220] sm:$0xff] }
  0x6c   : > { %2899 = vmatmul.mubr.msk.f32.vlgmr.msra.gmra.mrb[0].mxu0 %vm328_vm1, %v3608_v43  ;;  %3057 = vmatpush3.bf16.msra.mxu1 %v3054_v36  ;;  %v3126_v36 = vpack.c.bf16 %v2350_v4, %v2349_v32 }
  0x6d   : > { %3121 = vmatpush3.bf16.msra.mxu0 %v3118_v11  ;;  %2733 = vmatprep.mubr.msk.f32.mxu1 %vm328_vm1, %v3880_v17  ;;  %v2252_v11 = vld [vmem:[%s4438_s1 + $0x110] sm:$0xff]  ;;  %v2351_v17 = vld [vmem:[%s4438_s1 + $0x228] sm:$0xff] }
  0x6e   : > { %2901 = vmatprep.mubr.msk.f32.mxu0 %vm328_vm1, %v3620_v47  ;;  %3059 = vmatprep.subr.bf16.mxu1 %v3058_v21  ;;  %v3066_v45 = vpack.c.bf16 %v2252_v11, %v2251_v52  ;;  %v4320_v52 = vld [vmem:[%s4440_s3] ss:$0 sm:$0xff] }
  0x6f   : > { %2734 = vmatmul.mubr.msk.f32.gmra.mrb[2].mxu1 %vm328_vm1, %v3905_v38  ;;  %3123 = vmatprep.subr.bf16.mxu0 %v3122_v61  ;;  %v2352_v38 = vld [vmem:[%s4438_s1 + $0x230] sm:$0xff] }
  0x70   : > { %2902 = vmatmul.mubr.msk.f32.gmra.mrb[2].mxu0 %vm328_vm1, %v3623_v48  ;;  %2736 = vmatprep.mubr.msk.f32.mxu1 %vm328_vm1, %v3913_v60  ;;  %v3130_v22 = vpack.c.bf16 %v2352_v38, %v2351_v17 }
  0x71   : > { %2904 = vmatprep.mubr.msk.f32.mxu0 %vm328_vm1, %v3649_v63  ;;  %3061 = vmatpush3.bf16.msra.mxu1 %v3058_v21  ;;  %v2372_v21 = vld [vmem:[%s4438_s1 + $0x250] sm:$0xff] }
  0x72   : > { %3125 = vmatpush3.bf16.msra.mxu0 %v3122_v61  ;;  %3063 = vmatprep.subr.bf16.mxu1 %v3062_v23  ;;  %v2373_v61 = vld [vmem:[%s4438_s1 + $0x258] sm:$0xff] }
  0x73   : > { %2737 = vmatmul.mubr.msk.f32.gmra.mrb[4].mxu1 %vm328_vm1, %v3932_v55  ;;  %3127 = vmatprep.subr.bf16.mxu0 %v3126_v36 }
  0x74   : > { %2905 = vmatmul.mubr.msk.f32.gmra.mrb[4].mxu0 %vm328_vm1, %v3652_v0  ;;  %2739 = vmatprep.mubr.msk.f32.mxu1 %vm328_vm1, %v3938_v33 }
  0x75   : > { %2907 = vmatprep.mubr.msk.f32.mxu0 %vm328_vm1, %v3687_v14  ;;  %3065 = vmatpush3.bf16.msra.mxu1 %v3062_v23 }
  0x76   : > { %3129 = vmatpush3.bf16.msra.mxu0 %v3126_v36  ;;  %3067 = vmatprep.subr.bf16.mxu1 %v3066_v45 }
  0x77   : > { %2740 = vmatmul.mubr.msk.f32.gmra.mrb[6].mxu1 %vm328_vm1, %v3963_v39  ;;  %3131 = vmatprep.subr.bf16.mxu0 %v3130_v22 }
  0x78   : > { %2908 = vmatmul.mubr.msk.f32.gmra.mrb[6].mxu0 %vm328_vm1, %v3690_v15  ;;  %2742 = vmatprep.mubr.msk.f32.mxu1 %vm328_vm1, %v3967_v46 }
  0x79   : > { %2910 = vmatprep.mubr.msk.f32.mxu0 %vm328_vm1, %v3711_v28  ;;  %3069 = vmatpush3.bf16.msra.mxu1 %v3066_v45 }
  0x7a   : > { %3133 = vmatpush3.bf16.msra.mxu0 %v3130_v22  ;;  %2770 = vmatprep.subr.mxu1 %v2253_v18 }
  0x7b   : > { %2743 = vmatmul.mubr.msk.f32.gmra.mrb[8].mxu1 %vm328_vm1, %v3980_v5  ;;  %2938 = vmatprep.subr.mxu0 %v2353_v19 }
  0x7c   : > { %2911 = vmatmul.mubr.msk.f32.gmra.mrb[8].mxu0 %vm328_vm1, %v3722_v31  ;;  %2745 = vmatprep.mubr.msk.f32.mxu1 %vm328_vm1, %v3984_v9 }
  0x7d   : > { %2913 = vmatprep.mubr.msk.f32.mxu0 %vm328_vm1, %v3745_v41  ;;  %2771 = vmatpush3.msra.mxu1 %v2253_v18 }
  0x7e   : > { %2939 = vmatpush3.msra.mxu0 %v2353_v19  ;;  %3150 = vmatprep.subr.bf16.mxu1 %v3134_v51 }
  0x7f   : > { %2746 = vmatmul.mubr.msk.f32.gmra.mrb[10].mxu1 %vm328_vm1, %v4015_v54  ;;  %3135 = vmatprep.subr.bf16.mxu0 %v3134_v51 }
  0x80   : > { %2914 = vmatmul.mubr.msk.f32.gmra.mrb[10].mxu0 %vm328_vm1, %v3748_v44  ;;  %2748 = vmatprep.mubr.msk.f32.mxu1 %vm328_vm1, %v4019_v49 }
  0x81   : > { %2916 = vmatprep.mubr.msk.f32.mxu0 %vm328_vm1, %v3784_v62 }
  0x83   : > { %2749 = vmatmul.mubr.msk.f32.gmra.mrb[12].mxu1 %vm328_vm1, %v4032_v40 }
  0x84   : > { %2917 = vmatmul.mubr.msk.f32.gmra.mrb[12].mxu0 %vm328_vm1, %v3809_v13  ;;  %2751 = vmatprep.mubr.msk.f32.mxu1 %vm328_vm1, %v4036_v10 }
  0x85   : > { %2919 = vmatprep.mubr.msk.f32.mxu0 %vm328_vm1, %v3770_v57  ;;  %v3138_v57 = vpack.c.bf16 %v2373_v61, %v2372_v21 }
  0x87   : > { %2752 = vmatmul.mubr.msk.f32.gmra.mrb[14].mxu1 %vm328_vm1, %v4049_v56 }
  0x88   : > { %2920 = vmatmul.mubr.msk.f32.gmra.mrb[14].mxu0 %vm328_vm1, %v3804_v12  ;;  %2772 = vmatprep.mubr.msk.f32.mxu1 %vm328_vm1, %v3571_v24  ;;  %v3142_v24 = vpack.c.bf16 %v2375_v30, %v2374_v3 }
  0x89   : > { %2940 = vmatprep.mubr.msk.f32.mxu0 %vm328_vm1, %v3656_v1  ;;  %v2377_v1 = vld [vmem:[%s4438_s1 + $0x278] sm:$0xff] }
  0x8b   : > { %2773 = vmatmul.mubr.msk.f32.vlgmr.msra.gmra.mrb[0].mxu1 %vm328_vm1, %v3576_v27  ;;  %v2376_v27 = vld [vmem:[%s4438_s1 + $0x270] sm:$0xff] }
  0x8c   : > { %2941 = vmatmul.mubr.msk.f32.vlgmr.msra.gmra.mrb[0].mxu0 %vm328_vm1, %v3659_v2  ;;  %3155 = vmatpush3.bf16.msra.mxu1 %v3134_v51  ;;  %v4454_v2 = vld [vmem:[#allocation8_spill] sm:$0xff] }
  0x8d   : > { %3137 = vmatpush3.bf16.msra.mxu0 %v3134_v51  ;;  %2775 = vmatprep.mubr.msk.f32.mxu1 %vm328_vm1, %v3605_v42  ;;  %v3146_v42 = vpack.c.bf16 %v2377_v1, %v2376_v27 }
  0x8e   : > { %2943 = vmatprep.mubr.msk.f32.mxu0 %vm328_vm1, %v3667_v6  ;;  %3139 = vmatprep.subr.bf16.mxu0 %v3138_v57 }
  0x8f   : > { %2776 = vmatmul.mubr.msk.f32.gmra.mrb[2].mxu1 %vm328_vm1, %v3608_v43  ;;  %3151 = vmatprep.subr.bf16.mxu1 %v3138_v57  ;;  %v2378_v43 = vld [vmem:[%s4438_s1 + $0x280] sm:$0xff] }
  0x90   : > { %2944 = vmatmul.mubr.msk.f32.gmra.mrb[2].mxu0 %vm328_vm1, %v3699_v16  ;;  %2778 = vmatprep.mubr.msk.f32.mxu1 %vm328_vm1, %v3620_v47  ;;  %v4450_v47 = vld [vmem:[#allocation9_spill] sm:$0xff] }
  0x91   : > { %2946 = vmatprep.mubr.msk.f32.mxu0 %vm328_vm1, %v3706_v20  ;;  %3141 = vmatpush3.bf16.msra.mxu0 %v3138_v57 }
  0x92   : > { %3156 = vmatpush3.bf16.msra.mxu1 %v3138_v57  ;;  %3143 = vmatprep.subr.bf16.mxu0 %v3142_v24 }
  0x93   : > { %2779 = vmatmul.mubr.msk.f32.gmra.mrb[4].mxu1 %vm328_vm1, %v3623_v48  ;;  %3152 = vmatprep.subr.bf16.mxu1 %v3142_v24  ;;  %v4451_v48 = vld [vmem:[#allocation5_spill] sm:$0xff] }
  0x94   : > { %2947 = vmatmul.mubr.msk.f32.gmra.mrb[4].mxu0 %vm328_vm1, %v3738_v37  ;;  %2781 = vmatprep.mubr.msk.f32.mxu1 %vm328_vm1, %v3649_v63  ;;  %v4452_v63 = vld [vmem:[#allocation7_spill] sm:$0xff] }
  0x95   : > { %2949 = vmatprep.mubr.msk.f32.mxu0 %vm328_vm1, %v3751_v34  ;;  %3145 = vmatpush3.bf16.msra.mxu0 %v3142_v24 }
  0x96   : > { %3157 = vmatpush3.bf16.msra.mxu1 %v3142_v24  ;;  %3147 = vmatprep.subr.bf16.mxu0 %v3146_v42 }
  0x97   : > { %2782 = vmatmul.mubr.msk.f32.gmra.mrb[6].mxu1 %vm328_vm1, %v3652_v0  ;;  %3153 = vmatprep.subr.bf16.mxu1 %v3146_v42  ;;  %v4453_v0 = vld [vmem:[#allocation6_spill] sm:$0xff] }
  0x98   : > { %2950 = vmatmul.mubr.msk.f32.gmra.mrb[6].mxu0 %vm328_vm1, %v3775_v58  ;;  %2784 = vmatprep.mubr.msk.f32.mxu1 %vm328_vm1, %v3687_v14 }
  0x99   : > { %2952 = vmatprep.mubr.msk.f32.mxu0 %vm328_vm1, %v3794_v8  ;;  %3149 = vmatpush3.bf16.msra.mxu0 %v3146_v42 }
  0x9a   : > { %3158 = vmatpush3.bf16.msra.mxu1 %v3146_v42  ;;  %2980 = vmatprep.subr.mxu0 %v2378_v43 }
  0x9b   : > { %2785 = vmatmul.mubr.msk.f32.gmra.mrb[8].mxu1 %vm328_vm1, %v3690_v15  ;;  %3154 = vmatprep.subr.mxu1 %v2378_v43 }
  0x9c   : > { %2953 = vmatmul.mubr.msk.f32.gmra.mrb[8].mxu0 %vm328_vm1, %v3823_v25  ;;  %2787 = vmatprep.mubr.msk.f32.mxu1 %vm328_vm1, %v3711_v28 }
  0x9d   : > { %2955 = vmatprep.mubr.msk.f32.mxu0 %vm328_vm1, %v3826_v26  ;;  %2981 = vmatpush3.msra.mxu0 %v2378_v43 }
  0x9e   : > { %3159 = vmatpush3.msra.mxu1 %v2378_v43 }
  0x9f   : > { %2788 = vmatmul.mubr.msk.f32.gmra.mrb[10].mxu1 %vm328_vm1, %v3722_v31 }
  0xa0   : > { %2956 = vmatmul.mubr.msk.f32.gmra.mrb[10].mxu0 %vm328_vm1, %v3859_v59  ;;  %2790 = vmatprep.mubr.msk.f32.mxu1 %vm328_vm1, %v3745_v41 }
  0xa1   : > { %2958 = vmatprep.mubr.msk.f32.mxu0 %vm328_vm1, %v3863_v7 }
  0xa3   : > { %2791 = vmatmul.mubr.msk.f32.gmra.mrb[12].mxu1 %vm328_vm1, %v3748_v44 }
  0xa4   : > { %2959 = vmatmul.mubr.msk.f32.gmra.mrb[12].mxu0 %vm328_vm1, %v4450_v47  ;;  %2793 = vmatprep.mubr.msk.f32.mxu1 %vm328_vm1, %v3784_v62 }
  0xa5   : > { %2961 = vmatprep.mubr.msk.f32.mxu0 %vm328_vm1, %v4451_v48 }
  0xa7   : > { %2794 = vmatmul.mubr.msk.f32.gmra.mrb[14].mxu1 %vm328_vm1, %v3809_v13 }
  0xa8   : > { %2962 = vmatmul.mubr.msk.f32.gmra.mrb[14].mxu0 %vm328_vm1, %v4452_v63  ;;  %2994 = vmatprep.mubr.msk.f32.mxu1 %vm328_vm1, %v4019_v49 }
  0xa9   : > { %2982 = vmatprep.mubr.msk.f32.mxu0 %vm328_vm1, %v3913_v60 }
  0xab   : > { %2995 = vmatmul.mubr.msk.f32.vlgmr.msra.gmra.mrb[16].mxu1 %vm328_vm1, %v4032_v40 }
  0xac   : > { %2983 = vmatmul.mubr.msk.f32.vlgmr.msra.gmra.mrb[0].mxu0 %vm328_vm1, %v3932_v55  ;;  %2997 = vmatprep.mubr.msk.f32.mxu1 %vm328_vm1, %v4036_v10 }
  0xad   : > { %2985 = vmatprep.mubr.msk.f32.mxu0 %vm328_vm1, %v3938_v33 }
  0xaf   : > { %2998 = vmatmul.mubr.msk.f32.gmra.mrb[18].mxu1 %vm328_vm1, %v4049_v56 }
  0xb0   : > { %2986 = vmatmul.mubr.msk.f32.gmra.mrb[2].mxu0 %vm328_vm1, %v3963_v39  ;;  %3000 = vmatprep.mubr.msk.f32.mxu1 %vm328_vm1, %v4053_v35  ;;  %v4315_v35 = vld [vmem:[%s4439_s2] ss:$0 sm:$0xff] }
  0xb1   : > { %2988 = vmatprep.mubr.msk.f32.mxu0 %vm328_vm1, %v3967_v46 }
  0xb3   : > { %3001 = vmatmul.mubr.msk.f32.gmra.mrb[20].mxu1 %vm328_vm1, %v4064_v53 }
  0xb4   : > { %2989 = vmatmul.mubr.msk.f32.gmra.mrb[4].mxu0 %vm328_vm1, %v3980_v5  ;;  %3003 = vmatprep.mubr.msk.f32.mxu1 %vm328_vm1, %v4453_v0 }
  0xb5   : > { %2991 = vmatprep.mubr.msk.f32.mxu0 %vm328_vm1, %v3984_v9 }
  0xb7   : > { %3004 = vmatmul.mubr.msk.f32.gmra.mrb[22].mxu1 %vm328_vm1, %v4454_v2 }
  0xb8   : > { %2992 = vmatmul.mubr.msk.f32.gmra.mrb[6].mxu0 %vm328_vm1, %v4015_v54 }
 0x15e   : > { %v2774_v6 = vpop.f32.mrb[0].mxu1 }
 0x15f   : > { %v1009_v14 = vpop.f32.mrb[1].mxu1 }
 0x162   : > { %v2777_v15 = vpop.f32.mrb[2].mxu1 }
 0x163   : > { %v1019_v16 = vpop.f32.mrb[3].mxu1 }
 0x166   : > { %v4299_v20 = vpop.f32.mrb[4].mxu1 }
 0x167   : > { %v4301_v28 = vpop.f32.mrb[5].mxu1 }
 0x16a   : > { %v4303_v31 = vpop.f32.mrb[6].mxu1 }
 0x16b   : > { %v4305_v37 = vpop.f32.mrb[7].mxu1 }
 0x16e   : > { %v2786_v41 = vpop.f32.mrb[8].mxu1 }
 0x16f   : > { %v2954_v44 = vpop.f32.mrb[8].mxu0  ;;  %v1049_v34 = vpop.f32.mrb[9].mxu1 }
 0x170   : > { %v3168_v58 = vadd.f32 %v2954_v44, %v2786_v41  ;;  %v1768_v62 = vpop.f32.mrb[9].mxu0 }
 0x171   : > { %v3170_v8 = vadd.f32 %v1768_v62, %v1049_v34 }
 0x172   : > { %v2789_v12 = vpop.f32.mrb[10].mxu1 }
 0x173   : > { %v2957_v13 = vpop.f32.mrb[10].mxu0  ;;  %v1059_v25 = vpop.f32.mrb[11].mxu1 }
 0x174   : > { %v3172_v26 = vadd.f32 %v2957_v13, %v2789_v12  ;;  %v1778_v59 = vpop.f32.mrb[11].mxu0 }
 0x175   : > { %v3174_v7 = vadd.f32 %v1778_v59, %v1059_v25 }
 0x176   : > { %v2792_v60 = vpop.f32.mrb[12].mxu1 }
 0x177   : > { %v2960_v55 = vpop.f32.mrb[12].mxu0  ;;  %v1069_v33 = vpop.f32.mrb[13].mxu1 }
 0x178   : > { %v3176_v39 = vadd.f32 %v2960_v55, %v2792_v60  ;;  %v1788_v46 = vpop.f32.mrb[13].mxu0 }
 0x179   : > { %v3178_v5 = vadd.f32 %v1788_v46, %v1069_v33 }
 0x17a   : > { %v2795_v9 = vpop.f32.mrb[14].mxu1 }
 0x17b   : > { %v2963_v54 = vpop.f32.mrb[14].mxu0  ;;  %v1079_v49 = vpop.f32.mrb[15].mxu1 }
 0x17c   : > { %v4307_v40 = vadd.f32 %v2963_v54, %v2795_v9  ;;  %v1798_v10 = vpop.f32.mrb[15].mxu0 }
 0x17d   : > { %v4309_v56 = vadd.f32 %v1798_v10, %v1079_v49 }
 0x17e   : > { %v2996_v53 = vpop.f32.mrb[16].mxu1 }
 0x17f   : > { %v2984_v32 = vpop.f32.mrb[0].mxu0  ;;  %v3169_v4 = vadd.f32 %v3168_v58, %v2996_v53  ;;  %v1948_v23 = vpop.f32.mrb[17].mxu1 }
 0x180   : > { %v3160_v36 = vadd.f32 %v2984_v32, %v2774_v6  ;;  %v1908_v11 = vpop.f32.mrb[1].mxu0  ;;  %v3171_v17 = vadd.f32 %v3170_v8, %v1948_v23 }
 0x181   : > { %v2019_v38 = vmul.f32 %v3169_v4, %v4315_v35  ;;  %v3161_v45 = vadd.f32 %v1908_v11, %v1009_v14 }
 0x182   : > { %v2011_v22 = vmul.f32 %v3160_v36, %v4315_v35  ;;  %v2018_v18 = vmul.f32 %v3171_v17, %v4315_v35  ;;  %v2999_v50 = vpop.f32.mrb[18].mxu1 }
 0x183   : > { %v2042_v29 = vadd.f32 %v4320_v52, %v2019_v38  ;;  %v2010_v19 = vmul.f32 %v3161_v45, %v4315_v35  ;;  %v2987_v51 = vpop.f32.mrb[2].mxu0  ;;  %v3173_v21 = vadd.f32 %v3172_v26, %v2999_v50  ;;  %v1958_v61 = vpop.f32.mrb[19].mxu1 }
 0x184   : > { %v2034_v57 = vadd.f32 %v4320_v52, %v2011_v22  ;;  %v2041_v3 = vadd.f32 %v4320_v52, %v2018_v18  ;;  %v3162_v30 = vadd.f32 %v2987_v51, %v2777_v15  ;;  %v1918_v24 = vpop.f32.mrb[3].mxu0  ;;  %v3175_v27 = vadd.f32 %v3174_v7, %v1958_v61 }
 0x185   : > { %v2058_v1 = vmax.f32 %v2042_v29, 0.0  ;;  %v2033_v42 = vadd.f32 %v4320_v52, %v2010_v19  ;;  %v2021_v43 = vmul.f32 %v3173_v21, %v4315_v35  ;;  %v3163_v47 = vadd.f32 %v1918_v24, %v1019_v16 }
 0x186   : > { %v2050_v48 = vmax.f32 %v2034_v57, 0.0  ;;  %v2057_v63 = vmax.f32 %v2041_v3, 0.0  ;;  %v2013_v0 = vmul.f32 %v3162_v30, %v4315_v35  ;;  %v2020_v2 = vmul.f32 %v3175_v27, %v4315_v35  ;;  %v3002_v6 = vpop.f32.mrb[20].mxu1 }
 0x187   : > { %2074 = vst [vmem:[%s4335_s26 + $0x48] sm:$0xff] %v2058_v1  ;;  %v2049_v14 = vmax.f32 %v2033_v42, 0.0  ;;  %v2044_v15 = vadd.f32 %v4320_v52, %v2021_v43  ;;  %v2012_v41 = vmul.f32 %v3163_v47, %v4315_v35  ;;  %v2990_v16 = vpop.f32.mrb[4].mxu0  ;;  %v3177_v44 = vadd.f32 %v3176_v39, %v3002_v6  ;;  %v1968_v34 = vpop.f32.mrb[21].mxu1 }
 0x188   : > { %2066 = vst [vmem:[%s4335_s26 + $0x8] sm:$0xff] %v2050_v48  ;;  %2073 = vst [vmem:[%s4335_s26 + $0x40] sm:$0xff] %v2057_v63  ;;  %v2036_v58 = vadd.f32 %v4320_v52, %v2013_v0  ;;  %v2043_v62 = vadd.f32 %v4320_v52, %v2020_v2  ;;  %v3164_v8 = vadd.f32 %v2990_v16, %v4299_v20  ;;  %v1928_v12 = vpop.f32.mrb[5].mxu0 }
 0x189   : > { %v3179_v13 = vadd.f32 %v3178_v5, %v1968_v34  ;;  %2065 = vst [vmem:[%s4335_s26] sm:$0xff] %v2049_v14  ;;  %v2060_v25 = vmax.f32 %v2044_v15, 0.0  ;;  %v2035_v26 = vadd.f32 %v4320_v52, %v2012_v41  ;;  %v2023_v59 = vmul.f32 %v3177_v44, %v4315_v35 }
 0x18a   : > { %v3165_v7 = vadd.f32 %v1928_v12, %v4301_v28  ;;  %v2052_v60 = vmax.f32 %v2036_v58, 0.0  ;;  %v2059_v55 = vmax.f32 %v2043_v62, 0.0  ;;  %v2015_v33 = vmul.f32 %v3164_v8, %v4315_v35  ;;  %v3005_v20 = vpop.f32.mrb[22].mxu1 }
 0x18b   : > { %v2022_v39 = vmul.f32 %v3179_v13, %v4315_v35  ;;  %2076 = vst [vmem:[%s4335_s26 + $0x58] sm:$0xff] %v2060_v25  ;;  %v2051_v46 = vmax.f32 %v2035_v26, 0.0  ;;  %v2046_v5 = vadd.f32 %v4320_v52, %v2023_v59  ;;  %v2993_v54 = vpop.f32.mrb[6].mxu0  ;;  %v3181_v49 = vadd.f32 %v4307_v40, %v3005_v20  ;;  %v1978_v10 = vpop.f32.mrb[23].mxu1 }
 0x18c   : > { %v2014_v9 = vmul.f32 %v3165_v7, %v4315_v35  ;;  %2068 = vst [vmem:[%s4335_s26 + $0x18] sm:$0xff] %v2052_v60  ;;  %2075 = vst [vmem:[%s4335_s26 + $0x50] sm:$0xff] %v2059_v55  ;;  %v2038_v28 = vadd.f32 %v4320_v52, %v2015_v33  ;;  %v3166_v32 = vadd.f32 %v2993_v54, %v4303_v31  ;;  %v1938_v4 = vpop.f32.mrb[7].mxu0 }
 0x18d   : > { %v2045_v53 = vadd.f32 %v4320_v52, %v2022_v39  ;;  %v3183_v23 = vadd.f32 %v4309_v56, %v1978_v10  ;;  %2067 = vst [vmem:[%s4335_s26 + $0x10] sm:$0xff] %v2051_v46  ;;  %v2062_v36 = vmax.f32 %v2046_v5, 0.0  ;;  %v2025_v11 = vmul.f32 %v3181_v49, %v4315_v35 }
 0x18e   : > { %v2037_v40 = vadd.f32 %v4320_v52, %v2014_v9  ;;  %v3167_v17 = vadd.f32 %v1938_v4, %v4305_v37  ;;  %v2054_v38 = vmax.f32 %v2038_v28, 0.0  ;;  %v2017_v31 = vmul.f32 %v3166_v32, %v4315_v35 }
 0x18f   : > { %v2061_v45 = vmax.f32 %v2045_v53, 0.0  ;;  %v2024_v22 = vmul.f32 %v3183_v23, %v4315_v35  ;;  %2078 = vst [vmem:[%s4335_s26 + $0x68] sm:$0xff] %v2062_v36  ;;  %v2048_v56 = vadd.f32 %v4320_v52, %v2025_v11 }
 0x190   : > { %v2053_v18 = vmax.f32 %v2037_v40, 0.0  ;;  %v2016_v50 = vmul.f32 %v3167_v17, %v4315_v35  ;;  %2070 = vst [vmem:[%s4335_s26 + $0x28] sm:$0xff] %v2054_v38  ;;  %v2040_v37 = vadd.f32 %v4320_v52, %v2017_v31 }
 0x191   : > { %2077 = vst [vmem:[%s4335_s26 + $0x60] sm:$0xff] %v2061_v45  ;;  %v2047_v29 = vadd.f32 %v4320_v52, %v2024_v22  ;;  %v2064_v19 = vmax.f32 %v2048_v56, 0.0 }
 0x192   : > { %2069 = vst [vmem:[%s4335_s26 + $0x20] sm:$0xff] %v2053_v18  ;;  %v2039_v51 = vadd.f32 %v4320_v52, %v2016_v50  ;;  %v2056_v21 = vmax.f32 %v2040_v37, 0.0 }
 0x193   : > { %v2063_v61 = vmax.f32 %v2047_v29, 0.0  ;;  %2080 = vst [vmem:[%s4335_s26 + $0x78] sm:$0xff] %v2064_v19 }
 0x194   : > { %v2055_v35 = vmax.f32 %v2039_v51, 0.0  ;;  %2072 = vst [vmem:[%s4335_s26 + $0x38] sm:$0xff] %v2056_v21 }
 0x195   : > { %2079 = vst [vmem:[%s4335_s26 + $0x70] sm:$0xff] %v2063_v61 }
 0x196   : > { %2071 = vst [vmem:[%s4335_s26 + $0x30] sm:$0xff] %v2055_v35 }
 0x197   : > { %3359 = shalt.err (!%p3356_p5)
}
 0x198   : > { %s3360_s12 = scalar_lea.hbm %s4381_s18, 2048  ;;  %s3364_s21 = scalar_lea.hbm %s4441_s4, 4096 }
 0x199   : > { %p3361_p6 = scmp.ne.s32.totalorder %s4381_s18, %s3360_s12  ;;  %p3365_p10 = scmp.lt.u32.totalorder %s4381_s18, %s4441_s4 }
 0x19a   : > { %p3366_p11 = scmp.lt.u32.totalorder %s3364_s21, %s3360_s12  ;;  %p3368_p13 = scmp.lt.u32.totalorder %s3360_s12, %s4381_s18 }
 0x19b   : > { %p3362_p7 = pnand %p3361_p6, %p3494_p4 }
 0x19c   : > { %p3367_p12 = por %p3366_p11, %p3365_p10 }
 0x19d   : > { %p3363_p9 = pneg %p3362_p7 }
 0x19e   : > { %p3369_p0 = por %p3368_p13, %p3367_p12 }
 0x1a0   : > { %p3370_p1 = pnand %p3369_p0, %p3363_p9 }
 0x1a2   : > { %3373 = shalt.err (!%p3370_p1)
}
 0x1a3   : > { %s3427_s26 = smov 128   ;;  %s3428_s29 = smov 8  }
 0x1a4   : > { %3289 = dma.vmem_to_hbm [thread:$0]  (%p3494_p4), %s4383_s30, 2048, %s4381_s18, %s4391_s8, %s3427_s26, %s3427_s26, %s3428_s29  }
 0x1a5 PF: > { %p3295_p2 = scmp.ge.s32.totalorder %s3424_s20, 2  ;;  %s2112_s5 = sand.u32 1, %s3404_s15  }
 0x1a6   : > { %s2113_s6 = scalar_lea.sflag [#allocation3], %s2112_s5 }
 0x1a7   : > { %p3292_p3 = pnand %p3295_p2, %p3501_p8 }
 0x1a9   : > { %3399 = dma.done.wait (!%p3292_p3), %s2113_s6, 2048  }
 0x1aa   : > { %3401 = vsyncadd (!%p3292_p3), %s2113_s6, 4294965248  ;;  %s17_s20 = sadd.s32 1, %s3424_s20   ;;  %s4455_s15 = smov %s3408_s16 }
 0x1ab   : > { %p14_p5 = scmp.ge.s32.totalorder %s17_s20, 4   ;;  %s4456_s16 = smov %s3412_s17 }
 0x1ac   : > { %s4457_s17 = smov %s3507_s28  ;;  %s4458_s18 = smov %s3420_s19 }
 0x1ad   : > { %s4459_s19 = smov %s4461_s23  ;;  %16 = sbr.rel (!%p14_p5) target bundleno = 4 (0x4), region = 80 }
 0x1b4   :  { %2118 = vsyncpa [#allocation3], 1 }
 0x1b5   :  { %2120 = vsyncpa [#allocation3 + $0x1], 1 }

// kernel: tpu_custom_call.1
= control target key start
LH: loop header
LB: loop body
LE: loop exit
PB: predicated region body
PF: predicated region fallthrough
CT: control target
= control target key end

     0   :  { %9 = vsyncpa [#allocation3], 0  ;;  %s4437_s0 = inlined_call_operand.vmem [shape: f32[2,10,18,72], index: 0, kind: input, shape index: {}]   ;;  %s4438_s1 = inlined_call_operand.vmem [shape: f32[3,3,72,128], index: 1, kind: input, shape index: {}]   ;;  %s4439_s2 = inlined_call_operand.vmem [shape: f32[1,128], index: 2, kind: input, shape index: {}]   ;;  %s4440_s3 = inlined_call_operand.vmem [shape: f32[1,128], index: 3, kind: input, shape index: {}]   ;;  %s4441_s4 = inlined_call_operand.hbm [shape: f32[2,128,128], index: 4, kind: output, shape index: {}]  }
   0x1   :  { %11 = vsyncpa [#allocation3 + $0x1], 0  ;;  %s3454_s15 = smov 0   ;;  %s3456_s16 = smov 0  }
   0x2   :  { %s3458_s17 = smov 0   ;;  %s3460_s18 = smov 0  }
   0x3   :  { %s3462_s19 = smov 0   ;;  %s3464_s20 = smov 0  }
   0x4 LB: > { %s2172_s21 = sadd.s32 4294967295, %s3424_s20   ;;  %s2173_s22 = sadd.s32 4294967294, %s3424_s20   ;;  %s3424_s20 = sphi %s3464_s20, %s17_s20   ;;  %s3420_s19 = sphi %s3462_s19, %s4459_s19   ;;  %s3416_s18 = sphi %s3460_s18, %s4458_s18   ;;  %s3412_s17 = sphi %s3458_s17, %s4457_s17   ;;  %s3408_s16 = sphi %s3456_s16, %s4456_s16   ;;  %s3404_s15 = sphi %s3454_s15, %s4455_s15  }
   0x5   : > { %s29_s23 = sadd.s32 1, %s3420_s19  ;;  %s127_s24 = sadd.s32 1, %s3412_s17 }
   0x6   : > { %p31_p0 = scmp.ge.s32.totalorder %s29_s23, 2  ;;  %p137_p1 = scmp.ne.s32.totalorder %s3412_s17, %s3408_s16 }
   0x7   : > { %p138_p2 = scmp.eq.s32.totalorder %s2172_s21, 1  ;;  %p143_p3 = scmp.ne.s32.totalorder %s3408_s16, %s3404_s15 }
   0x8   : > { %s4461_s23 = smov (%p31_p0, %s29_s23), 0  ;;  %p144_p5 = scmp.eq.s32.totalorder %s2173_s22, 1 }
   0x9   : > { %p3494_p4 = por %p138_p2, %p137_p1  ;;  %s122_s26 = ssub.s32 %s3420_s19, %s4461_s23 }
   0xa   : > { %p2176_p6 = scmp.ge.s32.totalorder %s3424_s20, 1  ;;  %p125_p7 = scmp.eq.s32.totalorder %s122_s26, 0 }
   0xb   : > { %p3501_p8 = por %p144_p5, %p143_p3  ;;  %p179_p9 = scmp.lt.s32.totalorder %s3424_s20, 3 }
   0xc   : > { %s3507_s28 = scalar_select %p125_p7, %s3412_s17, %s127_s24  }
   0xd   : > { %p180_p10 = pnand %p2176_p6, %p179_p9 }
   0xf   : > { %183 = sbr.rel (%p180_p10) target bundleno = 421 (0x1a5), region = 36 }
  0x16   : > { %v2179_v0 = vld [vmem:[%s4438_s1 + $0x48] sm:$0xff]  ;;  %v2180_v1 = vld [vmem:[%s4438_s1 + $0x50] sm:$0xff]  ;;  %v2270_v2 = vld [vmem:[%s4438_s1 + $0x120] sm:$0xff]  ;;  %p205_p11 = scmp.lt.s32.totalorder %s3416_s18, 1  ;;  %vm277_vm0 = vcmask 1046528   ;;  %vm328_vm1 = vcmask 588800  }
  0x17   : > { %v3006_v3 = vpack.c.bf16 %v2180_v1, %v2179_v0  ;;  %v2271_v4 = vld [vmem:[%s4438_s1 + $0x128] sm:$0xff]  ;;  %v2181_v5 = vld [vmem:[%s4438_s1 + $0x58] sm:$0xff]  ;;  %v2182_v6 = vld [vmem:[%s4438_s1 + $0x60] sm:$0xff]  ;;  %vm683_vm2 = vcmask 1045504   ;;  %s2402_s29 = sshll.u32 %s3416_s18, 11  ;;  %s3426_s10 = smov [#allocation2]  }
  0x18   : > { %v3070_v7 = vpack.c.bf16 %v2271_v4, %v2270_v2  ;;  %v3010_v8 = vpack.c.bf16 %v2182_v6, %v2181_v5  ;;  %v2272_v9 = vld [vmem:[%s4438_s1 + $0x130] sm:$0xff]  ;;  %v2273_v10 = vld [vmem:[%s4438_s1 + $0x138] sm:$0xff]  ;;  %v2183_v11 = vld [vmem:[%s4438_s1 + $0x68] sm:$0xff]  ;;  %s206_s5 = scalar_select %p205_p11, %s3416_s18, 1 }
  0x19   : > { %3007 = vmatprep.subr.bf16.mxu1 %v3006_v3  ;;  %v3074_v12 = vpack.c.bf16 %v2273_v10, %v2272_v9  ;;  %v2184_v13 = vld [vmem:[%s4438_s1 + $0x70] sm:$0xff]  ;;  %v2274_v14 = vld [vmem:[%s4438_s1 + $0x140] sm:$0xff]  ;;  %v2275_v15 = vld [vmem:[%s4438_s1 + $0x148] sm:$0xff]  ;;  %s4381_s18 = scalar_lea.hbm %s4441_s4, %s2402_s29 }
  0x1a   : > { %3071 = vmatprep.subr.bf16.mxu0 %v3070_v7  ;;  %3009 = vmatpush3.bf16.msra.mxu1 %v3006_v3  ;;  %s3288_s12 = smul.u32 240, %s206_s5  ;;  %v3014_v16 = vpack.c.bf16 %v2184_v13, %v2183_v11  ;;  %v2185_v17 = vld [vmem:[%s4438_s1 + $0x78] sm:$0xff]  ;;  %v3078_v18 = vpack.c.bf16 %v2275_v15, %v2274_v14  ;;  %v2186_v19 = vld [vmem:[%s4438_s1 + $0x80] sm:$0xff]  ;;  %v2276_v20 = vld [vmem:[%s4438_s1 + $0x150] sm:$0xff] }
  0x1b   : > { %3073 = vmatpush3.bf16.msra.mxu0 %v3070_v7  ;;  %3011 = vmatprep.subr.bf16.mxu1 %v3010_v8  ;;  %v2277_v21 = vld [vmem:[%s4438_s1 + $0x158] sm:$0xff]  ;;  %v3018_v29 = vpack.c.bf16 %v2186_v19, %v2185_v17  ;;  %v2187_v36 = vld [vmem:[%s4438_s1 + $0x88] sm:$0xff]  ;;  %v2278_v37 = vld [vmem:[%s4438_s1 + $0x160] sm:$0xff] }
  0x1c   : > { %3075 = vmatprep.subr.bf16.mxu0 %v3074_v12  ;;  %s3562_s7 = scalar_lea.vmem %s4437_s0, %s3288_s12  ;;  %v3082_v31 = vpack.c.bf16 %v2277_v21, %v2276_v20  ;;  %v244_v39 = vld [vmem:[%s4438_s1] sm:$0xff]  ;;  %v245_v40 = vld [vmem:[%s4438_s1 + $0x8] sm:$0xff]  ;;  %v2296_v45 = vld [vmem:[%s4438_s1 + $0x170] sm:$0xff]  ;;  %s202_s12 = sand.u32 1, %s3408_s16  }
  0x1d   : > { %v3565_v22 = vld [vmem:[%s3562_s7] sm:$0xff]  ;;  %v3568_v23 = vld [vmem:[%s3562_s7 + $0x8] sm:$0xff]  ;;  %v3571_v24 = vld [vmem:[%s3562_s7 + $0x18] sm:$0xff]  ;;  %v3022_v50 = vpack.c.bf16 %v245_v40, %v244_v39  ;;  %s2177_s24 = sshll.u32 %s202_s12, 7  ;;  %s4391_s8 = scalar_lea.sflag [#allocation3], %s202_s12 }
  0x1e   : > { %3013 = vmatpush3.bf16.msra.mxu1 %v3010_v8  ;;  %v278_v25 = vrot.slane %v3565_v22, 1  ;;  %v279_v26 = vrot.slane %v3568_v23, 1  ;;  %v3576_v27 = vld [vmem:[%s3562_s7 + $0x20] sm:$0xff]  ;;  %v283_v28 = vrot.slane %v3571_v24, 1  ;;  %v3584_v34 = vld [vmem:[%s3562_s7 + $0x10] sm:$0x3] }
  0x1f   : > { %3077 = vmatpush3.bf16.msra.mxu0 %v3074_v12  ;;  %3015 = vmatprep.subr.bf16.mxu1 %v3014_v16  ;;  %v284_v30 = vrot.slane %v3576_v27, 1  ;;  %v3588_v35 = vld [vmem:[%s3562_s7 + $0x28] sm:$0x3]  ;;  %v281_v38 = vrot.slane %v3584_v34, 1  ;;  %v3605_v42 = vld [vmem:[%s3562_s7 + $0x30] sm:$0xff]  ;;  %v3608_v43 = vld [vmem:[%s3562_s7 + $0x38] sm:$0xff] }
  0x20   : > { %3079 = vmatprep.subr.bf16.mxu0 %v3078_v18  ;;  %v280_v32 = vsel %vm277_vm0, %v278_v25, %v279_v26  ;;  %v286_v41 = vrot.slane %v3588_v35, 1  ;;  %v2295_v44 = vld [vmem:[%s4438_s1 + $0x168] sm:$0xff]  ;;  %v3617_v46 = vld [vmem:[%s3562_s7 + $0x40] sm:$0x3]  ;;  %v3623_v48 = vld [vmem:[%s3562_s7 + $0x50] sm:$0xff]  ;;  %v288_v51 = vrot.slane %v3605_v42, 1 }
  0x21   : > { %2646 = vmatprep.mubr.msk.f32.mxu1 %vm328_vm1, %v280_v32  ;;  %v285_v33 = vsel %vm277_vm0, %v283_v28, %v284_v30  ;;  %v3620_v47 = vld [vmem:[%s3562_s7 + $0x48] sm:$0xff]  ;;  %v282_v49 = vsel %vm277_vm0, %v279_v26, %v281_v38  ;;  %v289_v52 = vrot.slane %v3608_v43, 1  ;;  %v3086_v54 = vpack.c.bf16 %v2296_v45, %v2295_v44  ;;  %v246_v56 = vld [vmem:[%s4438_s1 + $0x10] sm:$0xff]  ;;  %v247_v57 = vld [vmem:[%s4438_s1 + $0x18] sm:$0xff]  ;;  %s4335_s26 = scalar_lea.vmem [#allocation2], %s2177_s24 }
  0x22   : > { %3017 = vmatpush3.bf16.msra.mxu1 %v3014_v16  ;;  %2814 = vmatprep.mubr.msk.f32.mxu0 %vm328_vm1, %v285_v33  ;;  %v287_v53 = vsel %vm277_vm0, %v284_v30, %v286_v41  ;;  %v291_v55 = vrot.slane %v3617_v46, 1  ;;  %v293_v58 = vrot.slane %v3620_v47, 1  ;;  %v294_v59 = vrot.slane %v3623_v48, 1  ;;  %v2297_v60 = vld [vmem:[%s4438_s1 + $0x178] sm:$0xff]  ;;  %v2298_v62 = vld [vmem:[%s4438_s1 + $0x180] sm:$0xff]  ;;  %v3652_v0 = vld [vmem:[%s3562_s7 + $0x68] sm:$0xff] }
  0x23   : > { %3081 = vmatpush3.bf16.msra.mxu0 %v3078_v18  ;;  %3019 = vmatprep.subr.bf16.mxu1 %v3018_v29  ;;  %v3642_v61 = vld [vmem:[%s3562_s7 + $0x58] sm:$0x3]  ;;  %v3649_v63 = vld [vmem:[%s3562_s7 + $0x60] sm:$0xff]  ;;  %v3656_v1 = vsel %vm277_vm0, %v288_v51, %v289_v52  ;;  %v3026_v3 = vpack.c.bf16 %v247_v57, %v246_v56  ;;  %v3663_v5 = vld [vmem:[%s3562_s7 + $0x70] sm:$0x3]  ;;  %v3090_v7 = vpack.c.bf16 %v2298_v62, %v2297_v60  ;;  %v299_v9 = vrot.slane %v3652_v0, 1 }
  0x24   : > { %3083 = vmatprep.subr.bf16.mxu0 %v3082_v31  ;;  %v3659_v2 = vsel %vm277_vm0, %v289_v52, %v291_v55  ;;  %v296_v4 = vrot.slane %v3642_v61, 1  ;;  %v3667_v6 = vsel %vm277_vm0, %v293_v58, %v294_v59  ;;  %v298_v8 = vrot.slane %v3649_v63, 1  ;;  %v248_v10 = vld [vmem:[%s4438_s1 + $0x20] sm:$0xff]  ;;  %v249_v11 = vld [vmem:[%s4438_s1 + $0x28] sm:$0xff]  ;;  %v2300_v13 = vld [vmem:[%s4438_s1 + $0x190] sm:$0xff]  ;;  %s2097_s30 = sshll.u32 %s4335_s26, 4  ;;  %s4383_s30 = int_to_ptr.vmem [resolvable:$true] %s2097_s30 }
  0x25   : > { %v2299_v12 = vld [vmem:[%s4438_s1 + $0x188] sm:$0xff]  ;;  %v3687_v14 = vld [vmem:[%s3562_s7 + $0x78] sm:$0xff]  ;;  %v3690_v15 = vld [vmem:[%s3562_s7 + $0x80] sm:$0xff]  ;;  %v301_v17 = vrot.slane %v3663_v5, 1  ;;  %v3030_v18 = vpack.c.bf16 %v249_v11, %v248_v10  ;;  %v684_v51 = vrot.slane %v3565_v22, 2  ;;  %v685_v52 = vrot.slane %v3568_v23, 2 }
  0x26   : > { %3021 = vmatpush3.bf16.msra.mxu1 %v3018_v29  ;;  %v3699_v16 = vsel %vm277_vm0, %v294_v59, %v296_v4  ;;  %v3703_v19 = vld [vmem:[%s3562_s7 + $0x88] sm:$0x3]  ;;  %v3706_v20 = vsel %vm277_vm0, %v298_v8, %v299_v9  ;;  %v3094_v21 = vpack.c.bf16 %v2300_v13, %v2299_v12  ;;  %v303_v25 = vrot.slane %v3687_v14, 1  ;;  %v3711_v28 = vld [vmem:[%s3562_s7 + $0x90] sm:$0xff]  ;;  %v251_v30 = vld [vmem:[%s4438_s1 + $0x38] sm:$0xff]  ;;  %s3346_s9 = scalar_lea.vmem %s4383_s30, 2048 }
  0x27   : > { %3085 = vmatpush3.bf16.msra.mxu0 %v3082_v31  ;;  %2644 = vmatprep.subr.mxu1 %v2187_v36  ;;  %v304_v26 = vrot.slane %v3690_v15, 1  ;;  %v250_v29 = vld [vmem:[%s4438_s1 + $0x30] sm:$0xff]  ;;  %v3722_v31 = vld [vmem:[%s3562_s7 + $0x98] sm:$0xff]  ;;  %v306_v38 = vrot.slane %v3703_v19, 1  ;;  %v3742_v40 = vld [vmem:[%s3562_s7 + $0xa0] sm:$0x3]  ;;  %p3347_p12 = scmp.ne.s32.totalorder %s4383_s30, %s3346_s9 }
  0x28   : > { %2812 = vmatprep.subr.mxu0 %v2278_v37  ;;  %v2301_v32 = vld [vmem:[%s4438_s1 + $0x198] sm:$0xff]  ;;  %v3034_v39 = vpack.c.bf16 %v251_v30, %v250_v29  ;;  %v3745_v41 = vld [vmem:[%s3562_s7 + $0xa8] sm:$0xff]  ;;  %v3748_v44 = vld [vmem:[%s3562_s7 + $0xb0] sm:$0xff]  ;;  %v308_v45 = vrot.slane %v3711_v28, 1 }
  0x29   : > { %v314_v55 = vrot.slane %v3748_v44, 1  ;;  %v3767_v56 = vld [vmem:[%s3562_s7 + $0xb8] sm:$0x3]  ;;  %v3775_v58 = vsel %vm277_vm0, %v304_v26, %v306_v38  ;;  %v252_v59 = vld [vmem:[%s4438_s1 + $0x40] sm:$0xff]  ;;  %v2303_v60 = vld [vmem:[%s4438_s1 + $0x1a8] sm:$0xff]  ;;  %p3348_p13 = pnand %p3347_p12, %p3494_p4 }
  0x2a   : > { %2645 = vmatpush3.msra.mxu1 %v2187_v36  ;;  %v687_v36 = vrot.slane %v3584_v34, 2  ;;  %v3751_v34 = vsel %vm277_vm0, %v303_v25, %v304_v26  ;;  %v3770_v57 = vld [vmem:[%s3562_s7 + $0xd8] sm:$0xff]  ;;  %v3784_v62 = vld [vmem:[%s3562_s7 + $0xc0] sm:$0xff]  ;;  %v3809_v13 = vld [vmem:[%s3562_s7 + $0xc8] sm:$0xff]  ;;  %v316_v29 = vrot.slane %v3767_v56, 1 }
  0x2b   : > { %2813 = vmatpush3.msra.mxu0 %v2278_v37  ;;  %2647 = vmatmul.mubr.msk.f32.vlgmr.msra.gmra.mrb[0].mxu1 %vm328_vm1, %v282_v49  ;;  %v3738_v37 = vsel %vm277_vm0, %v299_v9, %v301_v17  ;;  %v309_v49 = vrot.slane %v3722_v31, 1  ;;  %v2220_v9 = vld [vmem:[%s4438_s1 + $0x90] sm:$0xff]  ;;  %v2221_v10 = vld [vmem:[%s4438_s1 + $0x98] sm:$0xff]  ;;  %v1823_v11 = vrot.slane %v3770_v57, 2  ;;  %v3804_v12 = vld [vmem:[%s3562_s7 + $0xe0] sm:$0xff]  ;;  %p3349_p0 = pneg %p3348_p13 }
  0x2c   : > { %3023 = vmatprep.subr.bf16.mxu1 %v3022_v50  ;;  %2815 = vmatmul.mubr.msk.f32.vlgmr.msra.gmra.mrb[0].mxu0 %vm328_vm1, %v287_v53  ;;  %v3790_v4 = vsel %vm683_vm2, %v685_v52, %v687_v36  ;;  %v2320_v17 = vld [vmem:[%s4438_s1 + $0x1b0] sm:$0xff]  ;;  %v1824_v30 = vrot.slane %v3804_v12, 2 }
  0x2d   : > { %3087 = vmatprep.subr.bf16.mxu0 %v3086_v54  ;;  %3025 = vmatpush3.bf16.msra.mxu1 %v3022_v50  ;;  %v3794_v8 = vsel %vm277_vm0, %v308_v45, %v309_v49  ;;  %v1105_v45 = vrot.slane %v3784_v62, 1 }
  0x2e   : > { %3089 = vmatpush3.bf16.msra.mxu0 %v3086_v54  ;;  %2649 = vmatprep.mubr.msk.f32.mxu1 %vm328_vm1, %v285_v33  ;;  %v2302_v33 = vld [vmem:[%s4438_s1 + $0x1a0] sm:$0xff]  ;;  %v313_v54 = vrot.slane %v3745_v41, 1 }
  0x2f   : > { %2817 = vmatprep.mubr.msk.f32.mxu0 %vm328_vm1, %v3656_v1  ;;  %2650 = vmatmul.mubr.msk.f32.gmra.mrb[2].mxu1 %vm328_vm1, %v287_v53  ;;  %v3098_v50 = vpack.c.bf16 %v2302_v33, %v2301_v32  ;;  %v311_v53 = vrot.slane %v3742_v40, 1  ;;  %v243_v32 = vld [vmem:[%s3562_s7 + $0xe8] sm:$0x3]  ;;  %v3038_v33 = vpack.c.bf16 %v2221_v10, %v2220_v9  ;;  %v689_v9 = vrot.slane %v3571_v24, 2 }
  0x30   : > { %2818 = vmatmul.mubr.msk.f32.gmra.mrb[2].mxu0 %vm328_vm1, %v3659_v2  ;;  %2652 = vmatprep.mubr.msk.f32.mxu1 %vm328_vm1, %v3656_v1  ;;  %v3826_v26 = vsel %vm277_vm0, %v313_v54, %v314_v55  ;;  %v1646_v38 = vrot.slane %v243_v32, 1  ;;  %v690_v10 = vrot.slane %v3576_v27, 2 }
  0x31   : > { %3027 = vmatprep.subr.bf16.mxu1 %v3026_v3  ;;  %2820 = vmatprep.mubr.msk.f32.mxu0 %vm328_vm1, %v3667_v6  ;;  %v3823_v25 = vsel %vm277_vm0, %v309_v49, %v311_v53  ;;  %v1106_v49 = vrot.slane %v3809_v13, 1 }
  0x32   : > { %3091 = vmatprep.subr.bf16.mxu0 %v3090_v7  ;;  %3029 = vmatpush3.bf16.msra.mxu1 %v3026_v3  ;;  %v3787_v3 = vsel %vm683_vm2, %v684_v51, %v685_v52  ;;  %v3842_v52 = vsel %vm683_vm2, %v1823_v11, %v1824_v30 }
  0x33   : > { %2653 = vmatmul.mubr.msk.f32.gmra.mrb[4].mxu1 %vm328_vm1, %v3659_v2  ;;  %3093 = vmatpush3.bf16.msra.mxu0 %v3090_v7  ;;  %v1643_v7 = vrot.slane %v3770_v57, 1  ;;  %4446 = vst [vmem:[#allocation6_spill] sm:$0xff] %v3842_v52 }
  0x34   : > { %2821 = vmatmul.mubr.msk.f32.gmra.mrb[4].mxu0 %vm328_vm1, %v3699_v16  ;;  %2655 = vmatprep.mubr.msk.f32.mxu1 %vm328_vm1, %v3667_v6 }
  0x35   : > { %2823 = vmatprep.mubr.msk.f32.mxu0 %vm328_vm1, %v3706_v20  ;;  %3031 = vmatprep.subr.bf16.mxu1 %v3030_v18 }
  0x36   : > { %3095 = vmatprep.subr.bf16.mxu0 %v3094_v21  ;;  %3033 = vmatpush3.bf16.msra.mxu1 %v3030_v18  ;;  %v2321_v18 = vld [vmem:[%s4438_s1 + $0x1b8] sm:$0xff] }
  0x37   : > { %2656 = vmatmul.mubr.msk.f32.gmra.mrb[6].mxu1 %vm328_vm1, %v3699_v16  ;;  %3097 = vmatpush3.bf16.msra.mxu0 %v3094_v21  ;;  %v1644_v21 = vrot.slane %v3804_v12, 1  ;;  %v3102_v51 = vpack.c.bf16 %v2321_v18, %v2320_v17  ;;  %v3880_v17 = vsel %vm683_vm2, %v689_v9, %v690_v10  ;;  %v694_v18 = vrot.slane %v3605_v42, 2 }
  0x38   : > { %2824 = vmatmul.mubr.msk.f32.gmra.mrb[6].mxu0 %vm328_vm1, %v3738_v37  ;;  %2658 = vmatprep.mubr.msk.f32.mxu1 %vm328_vm1, %v3706_v20 }
  0x39   : > { %2826 = vmatprep.mubr.msk.f32.mxu0 %vm328_vm1, %v3751_v34  ;;  %3035 = vmatprep.subr.bf16.mxu1 %v3034_v39  ;;  %v3834_v36 = vsel %vm277_vm0, %v1643_v7, %v1644_v21  ;;  %v3847_v53 = vsel %vm277_vm0, %v1644_v21, %v1646_v38  ;;  %v3863_v7 = vsel %vm277_vm0, %v1105_v45, %v1106_v49  ;;  %v695_v21 = vrot.slane %v3608_v43, 2 }
  0x3a   : > { %3099 = vmatprep.subr.bf16.mxu0 %v3098_v50  ;;  %3037 = vmatpush3.bf16.msra.mxu1 %v3034_v39  ;;  %4445 = vst [vmem:[#allocation5_spill] sm:$0xff] %v3834_v36  ;;  %v1826_v39 = vrot.slane %v243_v32, 2  ;;  %4447 = vst [vmem:[#allocation7_spill] sm:$0xff] %v3847_v53  ;;  %v2323_v32 = vld [vmem:[%s4438_s1 + $0x1c8] sm:$0xff]  ;;  %v720_v53 = vrot.slane %v3748_v44, 2 }
  0x3b   : > { %2659 = vmatmul.mubr.msk.f32.gmra.mrb[8].mxu1 %vm328_vm1, %v3738_v37  ;;  %3101 = vmatpush3.bf16.msra.mxu0 %v3098_v50  ;;  %v3839_v50 = vld [vmem:[%s3562_s7 + $0xd0] sm:$0x3]  ;;  %s3350_s7 = sshll.u32 %s3426_s10, 4  ;;  %s3351_s7 = int_to_ptr.vmem [resolvable:$false] %s3350_s7 }
  0x3c   : > { %2827 = vmatmul.mubr.msk.f32.gmra.mrb[8].mxu0 %vm328_vm1, %v3775_v58  ;;  %2661 = vmatprep.mubr.msk.f32.mxu1 %vm328_vm1, %v3751_v34  ;;  %v3850_v54 = vsel %vm683_vm2, %v1824_v30, %v1826_v39  ;;  %v2322_v30 = vld [vmem:[%s4438_s1 + $0x1c0] sm:$0xff]  ;;  %v697_v39 = vrot.slane %v3617_v46, 2  ;;  %v2225_v46 = vld [vmem:[%s4438_s1 + $0xb8] sm:$0xff]  ;;  %s3352_s11 = scalar_lea.vmem %s3351_s7, 4096  ;;  %p3353_p1 = scmp.lt.s32.totalorder %s4383_s30, %s3351_s7 }
  0x3d   : > { %2829 = vmatprep.mubr.msk.f32.mxu0 %vm328_vm1, %v3794_v8  ;;  %2686 = vmatprep.subr.mxu1 %v252_v59  ;;  %4448 = vst [vmem:[#allocation8_spill] sm:$0xff] %v3850_v54  ;;  %v3106_v9 = vpack.c.bf16 %v2323_v32, %v2322_v30  ;;  %v2224_v54 = vld [vmem:[%s4438_s1 + $0xb0] sm:$0xff]  ;;  %v2227_v30 = vld [vmem:[%s4438_s1 + $0xc8] sm:$0xff]  ;;  %p3354_p2 = scmp.lt.s32.totalorder %s3352_s11, %s3346_s9 }
  0x3e   : > { %2854 = vmatprep.subr.mxu0 %v2303_v60  ;;  %2687 = vmatpush3.msra.mxu1 %v252_v59  ;;  %v3859_v59 = vsel %vm277_vm0, %v314_v55, %v316_v29  ;;  %v692_v55 = vrot.slane %v3588_v35, 2  ;;  %v2222_v35 = vld [vmem:[%s4438_s1 + $0xa0] sm:$0xff]  ;;  %v2223_v29 = vld [vmem:[%s4438_s1 + $0xa8] sm:$0xff] }
  0x3f   : > { %2662 = vmatmul.mubr.msk.f32.gmra.mrb[10].mxu1 %vm328_vm1, %v3775_v58  ;;  %2855 = vmatpush3.msra.mxu0 %v2303_v60  ;;  %v1108_v60 = vrot.slane %v3839_v50, 1  ;;  %v3042_v45 = vpack.c.bf16 %v2223_v29, %v2222_v35  ;;  %v704_v35 = vrot.slane %v3649_v63, 2  ;;  %v705_v29 = vrot.slane %v3652_v0, 2  ;;  %v2327_v32 = vld [vmem:[%s4438_s1 + $0x1e8] sm:$0xff]  ;;  %p3355_p3 = por %p3354_p2, %p3353_p1 }
  0x40   : > { %2830 = vmatmul.mubr.msk.f32.gmra.mrb[10].mxu0 %vm328_vm1, %v3823_v25  ;;  %2664 = vmatprep.mubr.msk.f32.mxu1 %vm328_vm1, %v3794_v8  ;;  %v3905_v38 = vsel %vm683_vm2, %v690_v10, %v692_v55  ;;  %v2325_v10 = vld [vmem:[%s4438_s1 + $0x1d8] sm:$0xff]  ;;  %v3932_v55 = vsel %vm683_vm2, %v695_v21, %v697_v39 }
  0x41   : > { %2832 = vmatprep.mubr.msk.f32.mxu0 %vm328_vm1, %v3826_v26  ;;  %3039 = vmatprep.subr.bf16.mxu1 %v3038_v33  ;;  %v3877_v11 = vsel %vm277_vm0, %v1106_v49, %v1108_v60  ;;  %v699_v49 = vrot.slane %v3620_v47, 2  ;;  %v3913_v60 = vsel %vm683_vm2, %v694_v18, %v695_v21  ;;  %v702_v18 = vrot.slane %v3642_v61, 2  ;;  %v2226_v61 = vld [vmem:[%s4438_s1 + $0xc0] sm:$0xff]  ;;  %p3356_p5 = pnand %p3355_p3, %p3349_p0 }
  0x42   : > { %3103 = vmatprep.subr.bf16.mxu0 %v3102_v51  ;;  %4449 = vst [vmem:[#allocation9_spill] sm:$0xff] %v3877_v11  ;;  %v3050_v52 = vpack.c.bf16 %v2227_v30, %v2226_v61  ;;  %v2345_v61 = vld [vmem:[%s4438_s1 + $0x1f8] sm:$0xff]  ;;  %v2346_v30 = vld [vmem:[%s4438_s1 + $0x200] sm:$0xff] }
  0x43   : > { %2665 = vmatmul.mubr.msk.f32.gmra.mrb[12].mxu1 %vm328_vm1, %v3823_v25 }
  0x44   : > { %2833 = vmatmul.mubr.msk.f32.gmra.mrb[12].mxu0 %vm328_vm1, %v3859_v59  ;;  %2667 = vmatprep.mubr.msk.f32.mxu1 %vm328_vm1, %v3826_v26 }
  0x45   : > { %2835 = vmatprep.mubr.msk.f32.mxu0 %vm328_vm1, %v3863_v7 }
  0x47   : > { %2668 = vmatmul.mubr.msk.f32.gmra.mrb[14].mxu1 %vm328_vm1, %v3859_v59 }
  0x48   : > { %2836 = vmatmul.mubr.msk.f32.gmra.mrb[14].mxu0 %vm328_vm1, %v3877_v11  ;;  %2688 = vmatprep.mubr.msk.f32.mxu1 %vm328_vm1, %v3565_v22  ;;  %v700_v22 = vrot.slane %v3623_v48, 2  ;;  %v3118_v11 = vpack.c.bf16 %v2346_v30, %v2345_v61  ;;  %v2250_v30 = vld [vmem:[%s4438_s1 + $0x100] sm:$0xff] }
  0x49   : > { %2856 = vmatprep.mubr.msk.f32.mxu0 %vm328_vm1, %v3880_v17 }
  0x4a   : > { %v3963_v39 = vsel %vm683_vm2, %v700_v22, %v702_v18  ;;  %v714_v18 = vrot.slane %v3711_v28, 2 }
  0x4b   : > { %2689 = vmatmul.mubr.msk.f32.vlgmr.msra.gmra.mrb[0].mxu1 %vm328_vm1, %v3568_v23  ;;  %v2324_v23 = vld [vmem:[%s4438_s1 + $0x1d0] sm:$0xff] }
  0x4c   : > { %2857 = vmatmul.mubr.msk.f32.vlgmr.msra.gmra.mrb[0].mxu0 %vm328_vm1, %v3905_v38  ;;  %3041 = vmatpush3.bf16.msra.mxu1 %v3038_v33  ;;  %v3938_v33 = vsel %vm683_vm2, %v699_v49, %v700_v22  ;;  %v3110_v21 = vpack.c.bf16 %v2325_v10, %v2324_v23  ;;  %v707_v49 = vrot.slane %v3663_v5, 2  ;;  %v709_v23 = vrot.slane %v3687_v14, 2 }
  0x4d   : > { %3105 = vmatpush3.bf16.msra.mxu0 %v3102_v51  ;;  %2691 = vmatprep.mubr.msk.f32.mxu1 %vm328_vm1, %v3571_v24  ;;  %v3046_v51 = vpack.c.bf16 %v2225_v46, %v2224_v54  ;;  %v2326_v54 = vld [vmem:[%s4438_s1 + $0x1e0] sm:$0xff]  ;;  %v3967_v46 = vsel %vm683_vm2, %v704_v35, %v705_v29  ;;  %v710_v10 = vrot.slane %v3690_v15, 2  ;;  %v712_v22 = vrot.slane %v3703_v19, 2  ;;  %v2245_v19 = vld [vmem:[%s4438_s1 + $0xd8] sm:$0xff] }
  0x4e   : > { %2859 = vmatprep.mubr.msk.f32.mxu0 %vm328_vm1, %v3913_v60  ;;  %3043 = vmatprep.subr.bf16.mxu1 %v3042_v45  ;;  %v3980_v5 = vsel %vm683_vm2, %v705_v29, %v707_v49  ;;  %v715_v35 = vrot.slane %v3722_v31, 2  ;;  %v2228_v29 = vld [vmem:[%s4438_s1 + $0xd0] sm:$0xff] }
  0x4f   : > { %2692 = vmatmul.mubr.msk.f32.gmra.mrb[2].mxu1 %vm328_vm1, %v3576_v27  ;;  %3107 = vmatprep.subr.bf16.mxu0 %v3106_v9 }
  0x50   : > { %2860 = vmatmul.mubr.msk.f32.gmra.mrb[2].mxu0 %vm328_vm1, %v3932_v55  ;;  %2694 = vmatprep.mubr.msk.f32.mxu1 %vm328_vm1, %v3605_v42  ;;  %v4019_v49 = vsel %vm683_vm2, %v714_v18, %v715_v35  ;;  %v1288_v18 = vrot.slane %v3839_v50, 2  ;;  %v2247_v50 = vld [vmem:[%s4438_s1 + $0xe8] sm:$0xff] }
  0x51   : > { %2862 = vmatprep.mubr.msk.f32.mxu0 %vm328_vm1, %v3938_v33  ;;  %3045 = vmatpush3.bf16.msra.mxu1 %v3042_v45  ;;  %v3114_v45 = vpack.c.bf16 %v2327_v32, %v2326_v54  ;;  %v4015_v54 = vsel %vm683_vm2, %v710_v10, %v712_v22  ;;  %v717_v32 = vrot.slane %v3742_v40, 2  ;;  %v1286_v22 = vrot.slane %v3809_v13, 2 }
  0x52   : > { %3109 = vmatpush3.bf16.msra.mxu0 %v3106_v9  ;;  %3047 = vmatprep.subr.bf16.mxu1 %v3046_v51  ;;  %v3984_v9 = vsel %vm683_vm2, %v709_v23, %v710_v10  ;;  %v719_v23 = vrot.slane %v3745_v41, 2 }
  0x53   : > { %2695 = vmatmul.mubr.msk.f32.gmra.mrb[4].mxu1 %vm328_vm1, %v3608_v43  ;;  %3111 = vmatprep.subr.bf16.mxu0 %v3110_v21  ;;  %v4032_v40 = vsel %vm683_vm2, %v715_v35, %v717_v32  ;;  %v2349_v32 = vld [vmem:[%s4438_s1 + $0x218] sm:$0xff] }
  0x54   : > { %2863 = vmatmul.mubr.msk.f32.gmra.mrb[4].mxu0 %vm328_vm1, %v3963_v39  ;;  %2697 = vmatprep.mubr.msk.f32.mxu1 %vm328_vm1, %v3620_v47  ;;  %v4036_v10 = vsel %vm683_vm2, %v719_v23, %v720_v53 }
  0x55   : > { %2865 = vmatprep.mubr.msk.f32.mxu0 %vm328_vm1, %v3967_v46  ;;  %3049 = vmatpush3.bf16.msra.mxu1 %v3046_v51  ;;  %v2246_v51 = vld [vmem:[%s4438_s1 + $0xe0] sm:$0xff] }
  0x56   : > { %3113 = vmatpush3.bf16.msra.mxu0 %v3110_v21  ;;  %3051 = vmatprep.subr.bf16.mxu1 %v3050_v52  ;;  %v2328_v21 = vld [vmem:[%s4438_s1 + $0x1f0] sm:$0xff]  ;;  %v3054_v36 = vpack.c.bf16 %v2246_v51, %v2245_v19  ;;  %v2347_v19 = vld [vmem:[%s4438_s1 + $0x208] sm:$0xff] }
  0x57   : > { %2698 = vmatmul.mubr.msk.f32.gmra.mrb[6].mxu1 %vm328_vm1, %v3623_v48  ;;  %3115 = vmatprep.subr.bf16.mxu0 %v3114_v45  ;;  %v2348_v51 = vld [vmem:[%s4438_s1 + $0x210] sm:$0xff] }
  0x58   : > { %2866 = vmatmul.mubr.msk.f32.gmra.mrb[6].mxu0 %vm328_vm1, %v3980_v5  ;;  %2700 = vmatprep.mubr.msk.f32.mxu1 %vm328_vm1, %v3649_v63  ;;  %v3122_v61 = vpack.c.bf16 %v2348_v51, %v2347_v19  ;;  %v2353_v19 = vld [vmem:[%s4438_s1 + $0x238] sm:$0xff] }
  0x59   : > { %2868 = vmatprep.mubr.msk.f32.mxu0 %vm328_vm1, %v3984_v9  ;;  %3053 = vmatpush3.bf16.msra.mxu1 %v3050_v52  ;;  %v722_v52 = vrot.slane %v3767_v56, 2 }
  0x5a   : > { %3117 = vmatpush3.bf16.msra.mxu0 %v3114_v45  ;;  %2728 = vmatprep.subr.mxu1 %v2228_v29  ;;  %v1285_v45 = vrot.slane %v3784_v62, 2 }
  0x5b   : > { %2701 = vmatmul.mubr.msk.f32.gmra.mrb[8].mxu1 %vm328_vm1, %v3652_v0  ;;  %2896 = vmatprep.subr.mxu0 %v2328_v21  ;;  %v4049_v56 = vsel %vm683_vm2, %v720_v53, %v722_v52  ;;  %v4064_v53 = vsel %vm683_vm2, %v1286_v22, %v1288_v18  ;;  %v2251_v52 = vld [vmem:[%s4438_s1 + $0x108] sm:$0xff]  ;;  %v2253_v18 = vld [vmem:[%s4438_s1 + $0x118] sm:$0xff] }
  0x5c   : > { %2869 = vmatmul.mubr.msk.f32.gmra.mrb[8].mxu0 %vm328_vm1, %v4015_v54  ;;  %2703 = vmatprep.mubr.msk.f32.mxu1 %vm328_vm1, %v3687_v14  ;;  %v4053_v35 = vsel %vm683_vm2, %v1285_v45, %v1286_v22 }
  0x5d   : > { %2871 = vmatprep.mubr.msk.f32.mxu0 %vm328_vm1, %v4019_v49  ;;  %2729 = vmatpush3.msra.mxu1 %v2228_v29  ;;  %v2248_v29 = vld [vmem:[%s4438_s1 + $0xf0] sm:$0xff] }
  0x5e   : > { %2897 = vmatpush3.msra.mxu0 %v2328_v21  ;;  %3055 = vmatprep.subr.bf16.mxu1 %v3054_v36  ;;  %v3058_v21 = vpack.c.bf16 %v2248_v29, %v2247_v50  ;;  %v2370_v50 = vld [vmem:[%s4438_s1 + $0x240] sm:$0xff]  ;;  %v2371_v29 = vld [vmem:[%s4438_s1 + $0x248] sm:$0xff] }
  0x5f   : > { %2704 = vmatmul.mubr.msk.f32.gmra.mrb[10].mxu1 %vm328_vm1, %v3690_v15  ;;  %3119 = vmatprep.subr.bf16.mxu0 %v3118_v11  ;;  %v3134_v51 = vpack.c.bf16 %v2371_v29, %v2370_v50 }
  0x60   : > { %2872 = vmatmul.mubr.msk.f32.gmra.mrb[10].mxu0 %vm328_vm1, %v4032_v40  ;;  %2706 = vmatprep.mubr.msk.f32.mxu1 %vm328_vm1, %v3711_v28 }
  0x61   : > { %2874 = vmatprep.mubr.msk.f32.mxu0 %vm328_vm1, %v4036_v10 }
  0x63   : > { %2707 = vmatmul.mubr.msk.f32.gmra.mrb[12].mxu1 %vm328_vm1, %v3722_v31 }
  0x64   : > { %2875 = vmatmul.mubr.msk.f32.gmra.mrb[12].mxu0 %vm328_vm1, %v4049_v56  ;;  %2709 = vmatprep.mubr.msk.f32.mxu1 %vm328_vm1, %v3745_v41 }
  0x65   : > { %2877 = vmatprep.mubr.msk.f32.mxu0 %vm328_vm1, %v4053_v35 }
  0x67   : > { %2710 = vmatmul.mubr.msk.f32.gmra.mrb[14].mxu1 %vm328_vm1, %v3748_v44 }
  0x68   : > { %2878 = vmatmul.mubr.msk.f32.gmra.mrb[14].mxu0 %vm328_vm1, %v4064_v53  ;;  %2730 = vmatprep.mubr.msk.f32.mxu1 %vm328_vm1, %v3787_v3  ;;  %v2249_v3 = vld [vmem:[%s4438_s1 + $0xf8] sm:$0xff] }
  0x69   : > { %2898 = vmatprep.mubr.msk.f32.mxu0 %vm328_vm1, %v3605_v42  ;;  %v3062_v23 = vpack.c.bf16 %v2250_v30, %v2249_v3  ;;  %v2374_v3 = vld [vmem:[%s4438_s1 + $0x260] sm:$0xff]  ;;  %v2375_v30 = vld [vmem:[%s4438_s1 + $0x268] sm:$0xff] }
  0x6b   : > { %2731 = vmatmul.mubr.msk.f32.vlgmr.msra.gmra.mrb[0].mxu1 %vm328_vm1, %v3790_v4  ;;  %v2350_v4 = vld [vmem:[%s4438_s1 + $0x220] sm:$0xff] }
  0x6c   : > { %2899 = vmatmul.mubr.msk.f32.vlgmr.msra.gmra.mrb[0].mxu0 %vm328_vm1, %v3608_v43  ;;  %3057 = vmatpush3.bf16.msra.mxu1 %v3054_v36  ;;  %v3126_v36 = vpack.c.bf16 %v2350_v4, %v2349_v32 }
  0x6d   : > { %3121 = vmatpush3.bf16.msra.mxu0 %v3118_v11  ;;  %2733 = vmatprep.mubr.msk.f32.mxu1 %vm328_vm1, %v3880_v17  ;;  %v2252_v11 = vld [vmem:[%s4438_s1 + $0x110] sm:$0xff]  ;;  %v2351_v17 = vld [vmem:[%s4438_s1 + $0x228] sm:$0xff] }
  0x6e   : > { %2901 = vmatprep.mubr.msk.f32.mxu0 %vm328_vm1, %v3620_v47  ;;  %3059 = vmatprep.subr.bf16.mxu1 %v3058_v21  ;;  %v3066_v45 = vpack.c.bf16 %v2252_v11, %v2251_v52  ;;  %v4320_v52 = vld [vmem:[%s4440_s3] ss:$0 sm:$0xff] }
  0x6f   : > { %2734 = vmatmul.mubr.msk.f32.gmra.mrb[2].mxu1 %vm328_vm1, %v3905_v38  ;;  %3123 = vmatprep.subr.bf16.mxu0 %v3122_v61  ;;  %v2352_v38 = vld [vmem:[%s4438_s1 + $0x230] sm:$0xff] }
  0x70   : > { %2902 = vmatmul.mubr.msk.f32.gmra.mrb[2].mxu0 %vm328_vm1, %v3623_v48  ;;  %2736 = vmatprep.mubr.msk.f32.mxu1 %vm328_vm1, %v3913_v60  ;;  %v3130_v22 = vpack.c.bf16 %v2352_v38, %v2351_v17 }
  0x71   : > { %2904 = vmatprep.mubr.msk.f32.mxu0 %vm328_vm1, %v3649_v63  ;;  %3061 = vmatpush3.bf16.msra.mxu1 %v3058_v21  ;;  %v2372_v21 = vld [vmem:[%s4438_s1 + $0x250] sm:$0xff] }
  0x72   : > { %3125 = vmatpush3.bf16.msra.mxu0 %v3122_v61  ;;  %3063 = vmatprep.subr.bf16.mxu1 %v3062_v23  ;;  %v2373_v61 = vld [vmem:[%s4438_s1 + $0x258] sm:$0xff] }
  0x73   : > { %2737 = vmatmul.mubr.msk.f32.gmra.mrb[4].mxu1 %vm328_vm1, %v3932_v55  ;;  %3127 = vmatprep.subr.bf16.mxu0 %v3126_v36 }
  0x74   : > { %2905 = vmatmul.mubr.msk.f32.gmra.mrb[4].mxu0 %vm328_vm1, %v3652_v0  ;;  %2739 = vmatprep.mubr.msk.f32.mxu1 %vm328_vm1, %v3938_v33 }
  0x75   : > { %2907 = vmatprep.mubr.msk.f32.mxu0 %vm328_vm1, %v3687_v14  ;;  %3065 = vmatpush3.bf16.msra.mxu1 %v3062_v23 }
  0x76   : > { %3129 = vmatpush3.bf16.msra.mxu0 %v3126_v36  ;;  %3067 = vmatprep.subr.bf16.mxu1 %v3066_v45 }
  0x77   : > { %2740 = vmatmul.mubr.msk.f32.gmra.mrb[6].mxu1 %vm328_vm1, %v3963_v39  ;;  %3131 = vmatprep.subr.bf16.mxu0 %v3130_v22 }
  0x78   : > { %2908 = vmatmul.mubr.msk.f32.gmra.mrb[6].mxu0 %vm328_vm1, %v3690_v15  ;;  %2742 = vmatprep.mubr.msk.f32.mxu1 %vm328_vm1, %v3967_v46 }
  0x79   : > { %2910 = vmatprep.mubr.msk.f32.mxu0 %vm328_vm1, %v3711_v28  ;;  %3069 = vmatpush3.bf16.msra.mxu1 %v3066_v45 }
  0x7a   : > { %3133 = vmatpush3.bf16.msra.mxu0 %v3130_v22  ;;  %2770 = vmatprep.subr.mxu1 %v2253_v18 }
  0x7b   : > { %2743 = vmatmul.mubr.msk.f32.gmra.mrb[8].mxu1 %vm328_vm1, %v3980_v5  ;;  %2938 = vmatprep.subr.mxu0 %v2353_v19 }
  0x7c   : > { %2911 = vmatmul.mubr.msk.f32.gmra.mrb[8].mxu0 %vm328_vm1, %v3722_v31  ;;  %2745 = vmatprep.mubr.msk.f32.mxu1 %vm328_vm1, %v3984_v9 }
  0x7d   : > { %2913 = vmatprep.mubr.msk.f32.mxu0 %vm328_vm1, %v3745_v41  ;;  %2771 = vmatpush3.msra.mxu1 %v2253_v18 }
  0x7e   : > { %2939 = vmatpush3.msra.mxu0 %v2353_v19  ;;  %3150 = vmatprep.subr.bf16.mxu1 %v3134_v51 }
  0x7f   : > { %2746 = vmatmul.mubr.msk.f32.gmra.mrb[10].mxu1 %vm328_vm1, %v4015_v54  ;;  %3135 = vmatprep.subr.bf16.mxu0 %v3134_v51 }
  0x80   : > { %2914 = vmatmul.mubr.msk.f32.gmra.mrb[10].mxu0 %vm328_vm1, %v3748_v44  ;;  %2748 = vmatprep.mubr.msk.f32.mxu1 %vm328_vm1, %v4019_v49 }
  0x81   : > { %2916 = vmatprep.mubr.msk.f32.mxu0 %vm328_vm1, %v3784_v62 }
  0x83   : > { %2749 = vmatmul.mubr.msk.f32.gmra.mrb[12].mxu1 %vm328_vm1, %v4032_v40 }
  0x84   : > { %2917 = vmatmul.mubr.msk.f32.gmra.mrb[12].mxu0 %vm328_vm1, %v3809_v13  ;;  %2751 = vmatprep.mubr.msk.f32.mxu1 %vm328_vm1, %v4036_v10 }
  0x85   : > { %2919 = vmatprep.mubr.msk.f32.mxu0 %vm328_vm1, %v3770_v57  ;;  %v3138_v57 = vpack.c.bf16 %v2373_v61, %v2372_v21 }
  0x87   : > { %2752 = vmatmul.mubr.msk.f32.gmra.mrb[14].mxu1 %vm328_vm1, %v4049_v56 }
  0x88   : > { %2920 = vmatmul.mubr.msk.f32.gmra.mrb[14].mxu0 %vm328_vm1, %v3804_v12  ;;  %2772 = vmatprep.mubr.msk.f32.mxu1 %vm328_vm1, %v3571_v24  ;;  %v3142_v24 = vpack.c.bf16 %v2375_v30, %v2374_v3 }
  0x89   : > { %2940 = vmatprep.mubr.msk.f32.mxu0 %vm328_vm1, %v3656_v1  ;;  %v2377_v1 = vld [vmem:[%s4438_s1 + $0x278] sm:$0xff] }
  0x8b   : > { %2773 = vmatmul.mubr.msk.f32.vlgmr.msra.gmra.mrb[0].mxu1 %vm328_vm1, %v3576_v27  ;;  %v2376_v27 = vld [vmem:[%s4438_s1 + $0x270] sm:$0xff] }
  0x8c   : > { %2941 = vmatmul.mubr.msk.f32.vlgmr.msra.gmra.mrb[0].mxu0 %vm328_vm1, %v3659_v2  ;;  %3155 = vmatpush3.bf16.msra.mxu1 %v3134_v51  ;;  %v4454_v2 = vld [vmem:[#allocation8_spill] sm:$0xff] }
  0x8d   : > { %3137 = vmatpush3.bf16.msra.mxu0 %v3134_v51  ;;  %2775 = vmatprep.mubr.msk.f32.mxu1 %vm328_vm1, %v3605_v42  ;;  %v3146_v42 = vpack.c.bf16 %v2377_v1, %v2376_v27 }
  0x8e   : > { %2943 = vmatprep.mubr.msk.f32.mxu0 %vm328_vm1, %v3667_v6  ;;  %3139 = vmatprep.subr.bf16.mxu0 %v3138_v57 }
  0x8f   : > { %2776 = vmatmul.mubr.msk.f32.gmra.mrb[2].mxu1 %vm328_vm1, %v3608_v43  ;;  %3151 = vmatprep.subr.bf16.mxu1 %v3138_v57  ;;  %v2378_v43 = vld [vmem:[%s4438_s1 + $0x280] sm:$0xff] }
  0x90   : > { %2944 = vmatmul.mubr.msk.f32.gmra.mrb[2].mxu0 %vm328_vm1, %v3699_v16  ;;  %2778 = vmatprep.mubr.msk.f32.mxu1 %vm328_vm1, %v3620_v47  ;;  %v4450_v47 = vld [vmem:[#allocation9_spill] sm:$0xff] }
  0x91   : > { %2946 = vmatprep.mubr.msk.f32.mxu0 %vm328_vm1, %v3706_v20  ;;  %3141 = vmatpush3.bf16.msra.mxu0 %v3138_v57 }
  0x92   : > { %3156 = vmatpush3.bf16.msra.mxu1 %v3138_v57  ;;  %3143 = vmatprep.subr.bf16.mxu0 %v3142_v24 }
  0x93   : > { %2779 = vmatmul.mubr.msk.f32.gmra.mrb[4].mxu1 %vm328_vm1, %v3623_v48  ;;  %3152 = vmatprep.subr.bf16.mxu1 %v3142_v24  ;;  %v4451_v48 = vld [vmem:[#allocation5_spill] sm:$0xff] }
  0x94   : > { %2947 = vmatmul.mubr.msk.f32.gmra.mrb[4].mxu0 %vm328_vm1, %v3738_v37  ;;  %2781 = vmatprep.mubr.msk.f32.mxu1 %vm328_vm1, %v3649_v63  ;;  %v4452_v63 = vld [vmem:[#allocation7_spill] sm:$0xff] }
  0x95   : > { %2949 = vmatprep.mubr.msk.f32.mxu0 %vm328_vm1, %v3751_v34  ;;  %3145 = vmatpush3.bf16.msra.mxu0 %v3142_v24 }
  0x96   : > { %3157 = vmatpush3.bf16.msra.mxu1 %v3142_v24  ;;  %3147 = vmatprep.subr.bf16.mxu0 %v3146_v42 }
  0x97   : > { %2782 = vmatmul.mubr.msk.f32.gmra.mrb[6].mxu1 %vm328_vm1, %v3652_v0  ;;  %3153 = vmatprep.subr.bf16.mxu1 %v3146_v42  ;;  %v4453_v0 = vld [vmem:[#allocation6_spill] sm:$0xff] }
  0x98   : > { %2950 = vmatmul.mubr.msk.f32.gmra.mrb[6].mxu0 %vm328_vm1, %v3775_v58  ;;  %2784 = vmatprep.mubr.msk.f32.mxu1 %vm328_vm1, %v3687_v14 }
  0x99   : > { %2952 = vmatprep.mubr.msk.f32.mxu0 %vm328_vm1, %v3794_v8  ;;  %3149 = vmatpush3.bf16.msra.mxu0 %v3146_v42 }
  0x9a   : > { %3158 = vmatpush3.bf16.msra.mxu1 %v3146_v42  ;;  %2980 = vmatprep.subr.mxu0 %v2378_v43 }
  0x9b   : > { %2785 = vmatmul.mubr.msk.f32.gmra.mrb[8].mxu1 %vm328_vm1, %v3690_v15  ;;  %3154 = vmatprep.subr.mxu1 %v2378_v43 }
  0x9c   : > { %2953 = vmatmul.mubr.msk.f32.gmra.mrb[8].mxu0 %vm328_vm1, %v3823_v25  ;;  %2787 = vmatprep.mubr.msk.f32.mxu1 %vm328_vm1, %v3711_v28 }
  0x9d   : > { %2955 = vmatprep.mubr.msk.f32.mxu0 %vm328_vm1, %v3826_v26  ;;  %2981 = vmatpush3.msra.mxu0 %v2378_v43 }
  0x9e   : > { %3159 = vmatpush3.msra.mxu1 %v2378_v43 }
  0x9f   : > { %2788 = vmatmul.mubr.msk.f32.gmra.mrb[10].mxu1 %vm328_vm1, %v3722_v31 }
  0xa0   : > { %2956 = vmatmul.mubr.msk.f32.gmra.mrb[10].mxu0 %vm328_vm1, %v3859_v59  ;;  %2790 = vmatprep.mubr.msk.f32.mxu1 %vm328_vm1, %v3745_v41 }
  0xa1   : > { %2958 = vmatprep.mubr.msk.f32.mxu0 %vm328_vm1, %v3863_v7 }
  0xa3   : > { %2791 = vmatmul.mubr.msk.f32.gmra.mrb[12].mxu1 %vm328_vm1, %v3748_v44 }
  0xa4   : > { %2959 = vmatmul.mubr.msk.f32.gmra.mrb[12].mxu0 %vm328_vm1, %v4450_v47  ;;  %2793 = vmatprep.mubr.msk.f32.mxu1 %vm328_vm1, %v3784_v62 }
  0xa5   : > { %2961 = vmatprep.mubr.msk.f32.mxu0 %vm328_vm1, %v4451_v48 }
  0xa7   : > { %2794 = vmatmul.mubr.msk.f32.gmra.mrb[14].mxu1 %vm328_vm1, %v3809_v13 }
  0xa8   : > { %2962 = vmatmul.mubr.msk.f32.gmra.mrb[14].mxu0 %vm328_vm1, %v4452_v63  ;;  %2994 = vmatprep.mubr.msk.f32.mxu1 %vm328_vm1, %v4019_v49 }
  0xa9   : > { %2982 = vmatprep.mubr.msk.f32.mxu0 %vm328_vm1, %v3913_v60 }
  0xab   : > { %2995 = vmatmul.mubr.msk.f32.vlgmr.msra.gmra.mrb[16].mxu1 %vm328_vm1, %v4032_v40 }
  0xac   : > { %2983 = vmatmul.mubr.msk.f32.vlgmr.msra.gmra.mrb[0].mxu0 %vm328_vm1, %v3932_v55  ;;  %2997 = vmatprep.mubr.msk.f32.mxu1 %vm328_vm1, %v4036_v10 }
  0xad   : > { %2985 = vmatprep.mubr.msk.f32.mxu0 %vm328_vm1, %v3938_v33 }
  0xaf   : > { %2998 = vmatmul.mubr.msk.f32.gmra.mrb[18].mxu1 %vm328_vm1, %v4049_v56 }
  0xb0   : > { %2986 = vmatmul.mubr.msk.f32.gmra.mrb[2].mxu0 %vm328_vm1, %v3963_v39  ;;  %3000 = vmatprep.mubr.msk.f32.mxu1 %vm328_vm1, %v4053_v35  ;;  %v4315_v35 = vld [vmem:[%s4439_s2] ss:$0 sm:$0xff] }
  0xb1   : > { %2988 = vmatprep.mubr.msk.f32.mxu0 %vm328_vm1, %v3967_v46 }
  0xb3   : > { %3001 = vmatmul.mubr.msk.f32.gmra.mrb[20].mxu1 %vm328_vm1, %v4064_v53 }
  0xb4   : > { %2989 = vmatmul.mubr.msk.f32.gmra.mrb[4].mxu0 %vm328_vm1, %v3980_v5  ;;  %3003 = vmatprep.mubr.msk.f32.mxu1 %vm328_vm1, %v4453_v0 }
  0xb5   : > { %2991 = vmatprep.mubr.msk.f32.mxu0 %vm328_vm1, %v3984_v9 }
  0xb7   : > { %3004 = vmatmul.mubr.msk.f32.gmra.mrb[22].mxu1 %vm328_vm1, %v4454_v2 }
  0xb8   : > { %2992 = vmatmul.mubr.msk.f32.gmra.mrb[6].mxu0 %vm328_vm1, %v4015_v54 }
 0x15e   : > { %v2774_v6 = vpop.f32.mrb[0].mxu1 }
 0x15f   : > { %v1009_v14 = vpop.f32.mrb[1].mxu1 }
 0x162   : > { %v2777_v15 = vpop.f32.mrb[2].mxu1 }
 0x163   : > { %v1019_v16 = vpop.f32.mrb[3].mxu1 }
 0x166   : > { %v4299_v20 = vpop.f32.mrb[4].mxu1 }
 0x167   : > { %v4301_v28 = vpop.f32.mrb[5].mxu1 }
 0x16a   : > { %v4303_v31 = vpop.f32.mrb[6].mxu1 }
 0x16b   : > { %v4305_v37 = vpop.f32.mrb[7].mxu1 }
 0x16e   : > { %v2786_v41 = vpop.f32.mrb[8].mxu1 }
 0x16f   : > { %v2954_v44 = vpop.f32.mrb[8].mxu0  ;;  %v1049_v34 = vpop.f32.mrb[9].mxu1 }
 0x170   : > { %v3168_v58 = vadd.f32 %v2954_v44, %v2786_v41  ;;  %v1768_v62 = vpop.f32.mrb[9].mxu0 }
 0x171   : > { %v3170_v8 = vadd.f32 %v1768_v62, %v1049_v34 }
 0x172   : > { %v2789_v12 = vpop.f32.mrb[10].mxu1 }
 0x173   : > { %v2957_v13 = vpop.f32.mrb[10].mxu0  ;;  %v1059_v25 = vpop.f32.mrb[11].mxu1 }
 0x174   : > { %v3172_v26 = vadd.f32 %v2957_v13, %v2789_v12  ;;  %v1778_v59 = vpop.f32.mrb[11].mxu0 }
 0x175   : > { %v3174_v7 = vadd.f32 %v1778_v59, %v1059_v25 }
 0x176   : > { %v2792_v60 = vpop.f32.mrb[12].mxu1 }
 0x177   : > { %v2960_v55 = vpop.f32.mrb[12].mxu0  ;;  %v1069_v33 = vpop.f32.mrb[13].mxu1 }
 0x178   : > { %v3176_v39 = vadd.f32 %v2960_v55, %v2792_v60  ;;  %v1788_v46 = vpop.f32.mrb[13].mxu0 }
 0x179   : > { %v3178_v5 = vadd.f32 %v1788_v46, %v1069_v33 }
 0x17a   : > { %v2795_v9 = vpop.f32.mrb[14].mxu1 }
 0x17b   : > { %v2963_v54 = vpop.f32.mrb[14].mxu0  ;;  %v1079_v49 = vpop.f32.mrb[15].mxu1 }
 0x17c   : > { %v4307_v40 = vadd.f32 %v2963_v54, %v2795_v9  ;;  %v1798_v10 = vpop.f32.mrb[15].mxu0 }
 0x17d   : > { %v4309_v56 = vadd.f32 %v1798_v10, %v1079_v49 }
 0x17e   : > { %v2996_v53 = vpop.f32.mrb[16].mxu1 }
 0x17f   : > { %v2984_v32 = vpop.f32.mrb[0].mxu0  ;;  %v3169_v4 = vadd.f32 %v3168_v58, %v2996_v53  ;;  %v1948_v23 = vpop.f32.mrb[17].mxu1 }
 0x180   : > { %v3160_v36 = vadd.f32 %v2984_v32, %v2774_v6  ;;  %v1908_v11 = vpop.f32.mrb[1].mxu0  ;;  %v3171_v17 = vadd.f32 %v3170_v8, %v1948_v23 }
 0x181   : > { %v2019_v38 = vmul.f32 %v3169_v4, %v4315_v35  ;;  %v3161_v45 = vadd.f32 %v1908_v11, %v1009_v14 }
 0x182   : > { %v2011_v22 = vmul.f32 %v3160_v36, %v4315_v35  ;;  %v2018_v18 = vmul.f32 %v3171_v17, %v4315_v35  ;;  %v2999_v50 = vpop.f32.mrb[18].mxu1 }
 0x183   : > { %v2042_v29 = vadd.f32 %v4320_v52, %v2019_v38  ;;  %v2010_v19 = vmul.f32 %v3161_v45, %v4315_v35  ;;  %v2987_v51 = vpop.f32.mrb[2].mxu0  ;;  %v3173_v21 = vadd.f32 %v3172_v26, %v2999_v50  ;;  %v1958_v61 = vpop.f32.mrb[19].mxu1 }
 0x184   : > { %v2034_v57 = vadd.f32 %v4320_v52, %v2011_v22  ;;  %v2041_v3 = vadd.f32 %v4320_v52, %v2018_v18  ;;  %v3162_v30 = vadd.f32 %v2987_v51, %v2777_v15  ;;  %v1918_v24 = vpop.f32.mrb[3].mxu0  ;;  %v3175_v27 = vadd.f32 %v3174_v7, %v1958_v61 }
 0x185   : > { %v2058_v1 = vmax.f32 %v2042_v29, 0.0  ;;  %v2033_v42 = vadd.f32 %v4320_v52, %v2010_v19  ;;  %v2021_v43 = vmul.f32 %v3173_v21, %v4315_v35  ;;  %v3163_v47 = vadd.f32 %v1918_v24, %v1019_v16 }
 0x186   : > { %v2050_v48 = vmax.f32 %v2034_v57, 0.0  ;;  %v2057_v63 = vmax.f32 %v2041_v3, 0.0  ;;  %v2013_v0 = vmul.f32 %v3162_v30, %v4315_v35  ;;  %v2020_v2 = vmul.f32 %v3175_v27, %v4315_v35  ;;  %v3002_v6 = vpop.f32.mrb[20].mxu1 }
 0x187   : > { %2074 = vst [vmem:[%s4335_s26 + $0x48] sm:$0xff] %v2058_v1  ;;  %v2049_v14 = vmax.f32 %v2033_v42, 0.0  ;;  %v2044_v15 = vadd.f32 %v4320_v52, %v2021_v43  ;;  %v2012_v41 = vmul.f32 %v3163_v47, %v4315_v35  ;;  %v2990_v16 = vpop.f32.mrb[4].mxu0  ;;  %v3177_v44 = vadd.f32 %v3176_v39, %v3002_v6  ;;  %v1968_v34 = vpop.f32.mrb[21].mxu1 }
 0x188   : > { %2066 = vst [vmem:[%s4335_s26 + $0x8] sm:$0xff] %v2050_v48  ;;  %2073 = vst [vmem:[%s4335_s26 + $0x40] sm:$0xff] %v2057_v63  ;;  %v2036_v58 = vadd.f32 %v4320_v52, %v2013_v0  ;;  %v2043_v62 = vadd.f32 %v4320_v52, %v2020_v2  ;;  %v3164_v8 = vadd.f32 %v2990_v16, %v4299_v20  ;;  %v1928_v12 = vpop.f32.mrb[5].mxu0 }
 0x189   : > { %v3179_v13 = vadd.f32 %v3178_v5, %v1968_v34  ;;  %2065 = vst [vmem:[%s4335_s26] sm:$0xff] %v2049_v14  ;;  %v2060_v25 = vmax.f32 %v2044_v15, 0.0  ;;  %v2035_v26 = vadd.f32 %v4320_v52, %v2012_v41  ;;  %v2023_v59 = vmul.f32 %v3177_v44, %v4315_v35 }
 0x18a   : > { %v3165_v7 = vadd.f32 %v1928_v12, %v4301_v28  ;;  %v2052_v60 = vmax.f32 %v2036_v58, 0.0  ;;  %v2059_v55 = vmax.f32 %v2043_v62, 0.0  ;;  %v2015_v33 = vmul.f32 %v3164_v8, %v4315_v35  ;;  %v3005_v20 = vpop.f32.mrb[22].mxu1 }
 0x18b   : > { %v2022_v39 = vmul.f32 %v3179_v13, %v4315_v35  ;;  %2076 = vst [vmem:[%s4335_s26 + $0x58] sm:$0xff] %v2060_v25  ;;  %v2051_v46 = vmax.f32 %v2035_v26, 0.0  ;;  %v2046_v5 = vadd.f32 %v4320_v52, %v2023_v59  ;;  %v2993_v54 = vpop.f32.mrb[6].mxu0  ;;  %v3181_v49 = vadd.f32 %v4307_v40, %v3005_v20  ;;  %v1978_v10 = vpop.f32.mrb[23].mxu1 }
 0x18c   : > { %v2014_v9 = vmul.f32 %v3165_v7, %v4315_v35  ;;  %2068 = vst [vmem:[%s4335_s26 + $0x18] sm:$0xff] %v2052_v60  ;;  %2075 = vst [vmem:[%s4335_s26 + $0x50] sm:$0xff] %v2059_v55  ;;  %v2038_v28 = vadd.f32 %v4320_v52, %v2015_v33  ;;  %v3166_v32 = vadd.f32 %v2993_v54, %v4303_v31  ;;  %v1938_v4 = vpop.f32.mrb[7].mxu0 }
 0x18d   : > { %v2045_v53 = vadd.f32 %v4320_v52, %v2022_v39  ;;  %v3183_v23 = vadd.f32 %v4309_v56, %v1978_v10  ;;  %2067 = vst [vmem:[%s4335_s26 + $0x10] sm:$0xff] %v2051_v46  ;;  %v2062_v36 = vmax.f32 %v2046_v5, 0.0  ;;  %v2025_v11 = vmul.f32 %v3181_v49, %v4315_v35 }
 0x18e   : > { %v2037_v40 = vadd.f32 %v4320_v52, %v2014_v9  ;;  %v3167_v17 = vadd.f32 %v1938_v4, %v4305_v37  ;;  %v2054_v38 = vmax.f32 %v2038_v28, 0.0  ;;  %v2017_v31 = vmul.f32 %v3166_v32, %v4315_v35 }
 0x18f   : > { %v2061_v45 = vmax.f32 %v2045_v53, 0.0  ;;  %v2024_v22 = vmul.f32 %v3183_v23, %v4315_v35  ;;  %2078 = vst [vmem:[%s4335_s26 + $0x68] sm:$0xff] %v2062_v36  ;;  %v2048_v56 = vadd.f32 %v4320_v52, %v2025_v11 }
 0x190   : > { %v2053_v18 = vmax.f32 %v2037_v40, 0.0  ;;  %v2016_v50 = vmul.f32 %v3167_v17, %v4315_v35  ;;  %2070 = vst [vmem:[%s4335_s26 + $0x28] sm:$0xff] %v2054_v38  ;;  %v2040_v37 = vadd.f32 %v4320_v52, %v2017_v31 }
 0x191   : > { %2077 = vst [vmem:[%s4335_s26 + $0x60] sm:$0xff] %v2061_v45  ;;  %v2047_v29 = vadd.f32 %v4320_v52, %v2024_v22  ;;  %v2064_v19 = vmax.f32 %v2048_v56, 0.0 }
 0x192   : > { %2069 = vst [vmem:[%s4335_s26 + $0x20] sm:$0xff] %v2053_v18  ;;  %v2039_v51 = vadd.f32 %v4320_v52, %v2016_v50  ;;  %v2056_v21 = vmax.f32 %v2040_v37, 0.0 }
 0x193   : > { %v2063_v61 = vmax.f32 %v2047_v29, 0.0  ;;  %2080 = vst [vmem:[%s4335_s26 + $0x78] sm:$0xff] %v2064_v19 }
 0x194   : > { %v2055_v35 = vmax.f32 %v2039_v51, 0.0  ;;  %2072 = vst [vmem:[%s4335_s26 + $0x38] sm:$0xff] %v2056_v21 }
 0x195   : > { %2079 = vst [vmem:[%s4335_s26 + $0x70] sm:$0xff] %v2063_v61 }
 0x196   : > { %2071 = vst [vmem:[%s4335_s26 + $0x30] sm:$0xff] %v2055_v35 }
 0x197   : > { %3359 = shalt.err (!%p3356_p5)
}
 0x198   : > { %s3360_s12 = scalar_lea.hbm %s4381_s18, 2048  ;;  %s3364_s21 = scalar_lea.hbm %s4441_s4, 4096 }
 0x199   : > { %p3361_p6 = scmp.ne.s32.totalorder %s4381_s18, %s3360_s12  ;;  %p3365_p10 = scmp.lt.u32.totalorder %s4381_s18, %s4441_s4 }
 0x19a   : > { %p3366_p11 = scmp.lt.u32.totalorder %s3364_s21, %s3360_s12  ;;  %p3368_p13 = scmp.lt.u32.totalorder %s3360_s12, %s4381_s18 }
 0x19b   : > { %p3362_p7 = pnand %p3361_p6, %p3494_p4 }
 0x19c   : > { %p3367_p12 = por %p3366_p11, %p3365_p10 }
 0x19d   : > { %p3363_p9 = pneg %p3362_p7 }
 0x19e   : > { %p3369_p0 = por %p3368_p13, %p3367_p12 }
 0x1a0   : > { %p3370_p1 = pnand %p3369_p0, %p3363_p9 }
 0x1a2   : > { %3373 = shalt.err (!%p3370_p1)
}
 0x1a3   : > { %s3427_s26 = smov 128   ;;  %s3428_s29 = smov 8  }
 0x1a4   : > { %3289 = dma.vmem_to_hbm [thread:$0]  (%p3494_p4), %s4383_s30, 2048, %s4381_s18, %s4391_s8, %s3427_s26, %s3427_s26, %s3428_s29  }
 0x1a5 PF: > { %p3295_p2 = scmp.ge.s32.totalorder %s3424_s20, 2  ;;  %s2112_s5 = sand.u32 1, %s3404_s15  }
 0x1a6   : > { %s2113_s6 = scalar_lea.sflag [#allocation3], %s2112_s5 }
 0x1a7   : > { %p3292_p3 = pnand %p3295_p2, %p3501_p8 }
 0x1a9   : > { %3399 = dma.done.wait (!%p3292_p3), %s2113_s6, 2048  }
 0x1aa   : > { %3401 = vsyncadd (!%p3292_p3), %s2113_s6, 4294965248  ;;  %s17_s20 = sadd.s32 1, %s3424_s20   ;;  %s4455_s15 = smov %s3408_s16 }
 0x1ab   : > { %p14_p5 = scmp.ge.s32.totalorder %s17_s20, 4   ;;  %s4456_s16 = smov %s3412_s17 }
 0x1ac   : > { %s4457_s17 = smov %s3507_s28  ;;  %s4458_s18 = smov %s3420_s19 }
 0x1ad   : > { %s4459_s19 = smov %s4461_s23  ;;  %16 = sbr.rel (!%p14_p5) target bundleno = 4 (0x4), region = 80 }
 0x1b4   :  { %2118 = vsyncpa [#allocation3], 1 }
 0x1b5   :  { %2120 = vsyncpa [#allocation3 + $0x1], 1 }

</bundles_post_ra>
